<compile_context>
chip_gen: v7x
topology: tpu7x:2x2x1
jax: 0.10.0
libtpu: 0.0.40
codegen_flags: <defaults>
</compile_context>

<pallas_src>
import jax
import jax.numpy as jnp
import numpy as np
from jax import lax
from jax.experimental import pallas as pl
from jax.experimental.pallas import tpu as pltpu

# ---- hyperparameters (mirroring the module-level globals of the PyTorch file) ----
N_IN_CHANNELS = 1
N_FILTERS = 4
KERNEL_SIZE = 5          # padding=2 hardcoded in the module -> "same" spatial size
N_LAYERS = 2
PAD = 2
NEG_SLOPE = 0.2
MAX_IMGS_PER_STEP = 8    # cap images packed per grid step (VMEM / trace-size bound)


def _round_up(a, m):
    return -(-a // m) * m


def _pick_block(batch, max_blk=MAX_IMGS_PER_STEP):
    """Largest divisor of `batch` <= max_blk that still leaves >= 2 grid steps
    (keeps both v7x TensorCores busy); falls back to a single step."""
    for blk in range(min(batch, max_blk), 0, -1):
        if batch % blk == 0 and batch // blk >= 2:
            return blk
    return batch


def _make_icnn_kernel(nf, K, n_layers, Wp, S_pad, L, BASE, B_blk):
    """Per-grid-step kernel processing B_blk images packed along the lane axis.

    Wp   : padded image width            S_pad: lane-tile padded strip length
    L    : per-image extended buffer len BASE : lane-aligned flat offset of strip 0
    """
    shifts = [(kh - PAD) * Wp + (kw - PAD) for kh in range(K) for kw in range(K)]
    n_taps = len(shifts)                     # 25
    n_pairs = (n_taps + 1) // 2              # 13 -> 104 tap rows (8 per pair)
    halo_lo = BASE
    halo_hi = L - (BASE + S_pad)

    def kernel(xtaps_ref, mask_ref, g_ref, wx_ref, bx_ref, wz_ref,
               out_ref, taps_ref, zext_ref):
        mask = mask_ref[...]                                  # (1, B_blk*S_pad)

        def lrelu(v):
            return jnp.where(v > 0, v, NEG_SLOPE * v)

        # ---- zero ONLY the zext halos (interior strips are rewritten every layer);
        #      both halo stores are single full lane tiles, 128 columns wide.
        zeros_lo = jnp.zeros((nf, halo_lo), jnp.float32)
        zeros_hi = jnp.zeros((nf, halo_hi), jnp.float32)
        for b in range(B_blk):
            zext_ref[:, pl.ds(b * L, halo_lo)] = zeros_lo
            zext_ref[:, pl.ds(b * L + BASE + S_pad, halo_hi)] = zeros_hi

        # ---- all (n_layers+1) wx convolutions: one MXU matmul on the prebuilt
        #      x im2col stack (DEFAULT precision, f32 accumulation).
        yx_all = jnp.dot(wx_ref[...], xtaps_ref[0],
                         preferred_element_type=jnp.float32) + bx_ref[...]

        def store_interior(zval):
            # lane-aligned (BASE, L multiples of 128), full-lane-tile stores
            for b in range(B_blk):
                zext_ref[:, pl.ds(b * L + BASE, S_pad)] = \
                    zval[:, b * S_pad:(b + 1) * S_pad]

        pad_rows = jnp.zeros((nf, S_pad), jnp.float32)        # hoisted constant

        def build_ztaps():
            # paired taps: two 4-channel shifts stacked into one (8, S_pad) store,
            # so every tap store is 8-sublane aligned and covers full lane tiles.
            for b in range(B_blk):
                src = b * L + BASE
                dst = b * S_pad
                for p in range(n_pairs):
                    lo = zext_ref[:, pl.ds(src + shifts[2 * p], S_pad)]
                    if 2 * p + 1 < n_taps:
                        hi = zext_ref[:, pl.ds(src + shifts[2 * p + 1], S_pad)]
                    else:
                        hi = pad_rows                          # rows 100..103 (zero wz cols)
                    taps_ref[pl.ds(8 * p, 8), pl.ds(dst, S_pad)] = \
                        jnp.concatenate([lo, hi], axis=0)

        # ---- z0 = lrelu(wx[0](x));  z_{l+1} = lrelu(wz[l](z_l) + wx[l+1](x)) -------
        z = lrelu(yx_all[0:nf, :]) * mask
        for l in range(n_layers):
            store_interior(z)           # z_l feeds layer l's conv
            build_ztaps()
            yz = jnp.dot(wz_ref[l], taps_ref[...],
                         preferred_element_type=jnp.float32)
            z = lrelu(yz + yx_all[nf * (l + 1):nf * (l + 2), :]) * mask

        # ---- final conv + global avg-pool + sum is linear in z: folded into the
        #      precomputed per-position weight map g -> one multiply + full reduce.
        total = jnp.sum(z * g_ref[...])
        out_ref[...] = total * jnp.ones((1, 1, 1), jnp.float32)

    return kernel


def icnn_forward_pallas(x_nchw, params):
    wx_w, wx_b, wz_w, wf = params
    B, Cin, H, W = x_nchw.shape
    K, nf, n_layers = KERNEL_SIZE, N_FILTERS, N_LAYERS
    assert K == 2 * PAD + 1, "stride-1 'same' conv assumption (avg-pool divisor)"
    assert nf == 4, "paired 8-sublane tap layout assumes 4 filters"
    Hp, Wp = H + 2 * PAD, W + 2 * PAD

    S = H * Wp                               # strip: output rows x padded columns
    S_pad = _round_up(S, 128)                # full lane tiles (320 -> 384)
    Kx = _round_up(K * K * Cin, 8)           # x-conv contraction rows (32)
    n_pairs = (K * K + 1) // 2
    Kz = 8 * n_pairs                         # z-conv contraction rows (104)
    max_shift = PAD * Wp + PAD
    BASE = _round_up(max_shift, 128)         # lane-aligned interior offset (128)
    L = _round_up(BASE + S_pad + max_shift, 128)   # per-image extended length (640)

    B_blk = _pick_block(B)
    assert B % B_blk == 0
    G = B // B_blk
    N = B_blk * S_pad

    x = x_nchw.astype(jnp.float32)

    # ---- x im2col hoisted to XLA (layout plumbing, hidden by BlockSpec pipelining) --
    xflat = jnp.pad(x, ((0, 0), (0, 0), (PAD, PAD), (PAD, PAD))).reshape(B, Cin, Hp * Wp)
    xflat = jnp.pad(xflat, ((0, 0), (0, 0), (PAD, PAD)))       # guard for +-PAD shifts
    base0 = PAD + PAD * Wp
    rows = []
    for kh in range(K):
        for kw in range(K):
            s = (kh - PAD) * Wp + (kw - PAD)
            rows.append(xflat[:, :, base0 + s: base0 + s + S])  # (B, Cin, S)
    xt = jnp.stack(rows, axis=1).reshape(B, K * K * Cin, S)
    xt = jnp.pad(xt, ((0, 0), (0, Kx - K * K * Cin), (0, S_pad - S)))
    xt = xt.reshape(G, B_blk, Kx, S_pad).transpose(0, 2, 1, 3).reshape(G, Kx, N)

    # ---- valid-column mask over one padded strip, tiled across the image block -----
    idx = np.arange(S_pad)
    col = idx % Wp
    valid = (idx < S) & (col >= PAD) & (col < PAD + W)
    mask_full = jnp.tile(jnp.asarray(valid.astype(np.float32))[None, :], (1, B_blk))

    # ---- conv weights packed as [c_out, K*K*c_in] matrices --------------------------
    def w2mat(w, kdim):
        cout, wcin, k, _ = w.shape
        m = jnp.transpose(w, (0, 2, 3, 1)).reshape(cout, k * k * wcin).astype(jnp.float32)
        return jnp.pad(m, ((0, 0), (0, kdim - k * k * wcin)))

    nwx = (n_layers + 1) * nf
    wx_all = jnp.concatenate([w2mat(w, Kx) for w in wx_w], axis=0)        # (12, 32)
    bx_all = jnp.concatenate([b.reshape(nf, 1).astype(jnp.float32)
                              for b in wx_b], axis=0)                     # (12, 1)
    wz_all = jnp.stack([w2mat(w, Kz) for w in wz_w], axis=0)              # (2, 4, 104)

    # ---- final conv + global avg-pool + sum folded into per-position weights g ------
    # g[c,i,j] = sum_{kh,kw} wf[0,c,kh,kw] * 1[0<=i-kh+PAD<H] * 1[0<=j-kw+PAD<W]
    io, ko = jnp.arange(H)[:, None], jnp.arange(K)[None, :]
    jo = jnp.arange(W)[:, None]
    row_ok = ((io - ko + PAD >= 0) & (io - ko + PAD < H)).astype(jnp.float32)
    col_ok = ((jo - ko + PAD >= 0) & (jo - ko + PAD < W)).astype(jnp.float32)
    g_map = jnp.einsum('ik,jl,ckl->cij', row_ok, col_ok, wf[0].astype(jnp.float32))
    g_img = jnp.zeros((nf, H, Wp), jnp.float32).at[:, :, PAD:PAD + W].set(g_map)
    g_strip = jnp.zeros((nf, S_pad), jnp.float32).at[:, :S].set(g_img.reshape(nf, S))
    g_full = jnp.tile(g_strip, (1, B_blk))

    kernel = _make_icnn_kernel(nf, K, n_layers, Wp, S_pad, L, BASE, B_blk)

    out = pl.pallas_call(
        kernel,
        out_shape=jax.ShapeDtypeStruct((G, 1, 1), jnp.float32),
        grid=(G,),
        in_specs=[
            pl.BlockSpec((1, Kx, N), lambda i: (i, 0, 0)),          # x im2col (per block)
            pl.BlockSpec((1, N), lambda i: (0, 0)),                 # column mask
            pl.BlockSpec((nf, N), lambda i: (0, 0)),                # final-reduction map
            pl.BlockSpec((nwx, Kx), lambda i: (0, 0)),              # fused wx weights
            pl.BlockSpec((nwx, 1), lambda i: (0, 0)),               # fused wx bias
            pl.BlockSpec((n_layers, nf, Kz), lambda i: (0, 0, 0)),  # wz weights
        ],
        out_specs=pl.BlockSpec((1, 1, 1), lambda i: (i, 0, 0)),
        scratch_shapes=[pltpu.VMEM((Kz, N), jnp.float32),           # z tap stack
                        pltpu.VMEM((nf, B_blk * L), jnp.float32)],  # padded z buffers
        compiler_params=pltpu.CompilerParams(dimension_semantics=("parallel",)),
    )(xt, mask_full, g_full, wx_all, bx_all, wz_all)

    # epilogue in plain JAX: avg-pool divisor + sum of per-block partial sums
    return jnp.sum(out) * (1.0 / float(H * W))


def icnn_forward_ref(x_nchw, params):
    # pure-JAX reference (numerical validation only), full-precision convs
    wx_w, wx_b, wz_w, wf = params

    def conv(x, w, b=None):
        out = lax.conv_general_dilated(x, w, (1, 1), ((PAD, PAD), (PAD, PAD)),
                                       dimension_numbers=("NCHW", "OIHW", "NCHW"),
                                       precision=lax.Precision.HIGHEST)
        if b is not None:
            out = out + b[None, :, None, None]
        return out

    def lrelu(v):
        return jnp.where(v > 0, v, NEG_SLOPE * v)

    z = lrelu(conv(x_nchw, wx_w[0], wx_b[0]))
    for l in range(N_LAYERS):
        z = lrelu(conv(z, wz_w[l]) + conv(x_nchw, wx_w[l + 1], wx_b[l + 1]))
    z = conv(z, wf)
    z_avg = jnp.mean(z, axis=(2, 3)).reshape(z.shape[0], -1)
    return jnp.sum(z_avg)


def init_params(key):
    # deterministic synthetic init (shapes exactly as in the module __init__)
    n_keys = 2 * (N_LAYERS + 1) + N_LAYERS + 1
    keys = iter(jax.random.split(key, n_keys))
    wx_w = [jax.random.uniform(next(keys),
                               (N_FILTERS, N_IN_CHANNELS, KERNEL_SIZE, KERNEL_SIZE),
                               jnp.float32, -0.1, 0.1) for _ in range(N_LAYERS + 1)]
    wx_b = [jax.random.uniform(next(keys), (N_FILTERS,), jnp.float32, -0.1, 0.1)
            for _ in range(N_LAYERS + 1)]
    # non-negative, tiny values as in initialize_weights(min=0.0, max=0.001)
    wz_w = [jax.random.uniform(next(keys),
                               (N_FILTERS, N_FILTERS, KERNEL_SIZE, KERNEL_SIZE),
                               jnp.float32, 0.0, 0.001) for _ in range(N_LAYERS)]
    wf = jax.random.uniform(next(keys),
                            (1, N_FILTERS, KERNEL_SIZE, KERNEL_SIZE),
                            jnp.float32, 0.0, 0.001)
    return wx_w, wx_b, wz_w, wf


if __name__ == "__main__":
    key = jax.random.PRNGKey(0)
    kx, kp = jax.random.split(key)
    x = jax.random.normal(kx, (2, N_IN_CHANNELS, 16, 16), jnp.float32)
    params = init_params(kp)

    fwd = jax.jit(icnn_forward_pallas)
    out = jax.block_until_ready(fwd(x, params))

    ref = icnn_forward_ref(x, params)
    # DEFAULT MXU precision (bf16 multiply passes) per perf review -> looser tolerance
    # than the f32-HIGHEST reference; a real indexing/shift bug would be orders of
    # magnitude outside this band.
    np.testing.assert_allclose(float(out), float(ref), rtol=2e-2, atol=5e-4)
    print("KERNEL_OK")
</pallas_src>

<mosaic_0001>
module attributes {stable_mosaic.version = 11 : i64} {
  func.func @kernel(%arg0: i32, %arg1: memref<1x32x384xf32, #tpu.memory_space<vmem>>, %arg2: memref<1x384xf32, #tpu.memory_space<vmem>>, %arg3: memref<4x384xf32, #tpu.memory_space<vmem>>, %arg4: memref<12x32xf32, #tpu.memory_space<vmem>>, %arg5: memref<12x1xf32, #tpu.memory_space<vmem>>, %arg6: memref<2x4x104xf32, #tpu.memory_space<vmem>>, %arg7: memref<1x1x1xf32, #tpu.memory_space<vmem>>, %arg8: memref<104x384xf32, #tpu.memory_space<vmem>>, %arg9: memref<4x640xf32, #tpu.memory_space<vmem>>) attributes {dimension_semantics = [#tpu.dimension_semantics<parallel>], iteration_bounds = array<i64: 2>, scalar_prefetch = 0 : i64, scratch_operands = 2 : i64, tpu.core_type = #tpu.core_type<tc>, window_params = [{transform_indices = @transform_0, window_bounds = array<i64: 1, 32, 384>}, {pipeline_mode = #tpu.pipeline_mode<synchronous>, transform_indices = @transform_1, window_bounds = array<i64: 1, 384>}, {pipeline_mode = #tpu.pipeline_mode<synchronous>, transform_indices = @transform_2, window_bounds = array<i64: 4, 384>}, {pipeline_mode = #tpu.pipeline_mode<synchronous>, transform_indices = @transform_3, window_bounds = array<i64: 12, 32>}, {pipeline_mode = #tpu.pipeline_mode<synchronous>, transform_indices = @transform_4, window_bounds = array<i64: 12, 1>}, {pipeline_mode = #tpu.pipeline_mode<synchronous>, transform_indices = @transform_5, window_bounds = array<i64: 2, 4, 104>}, {transform_indices = @transform_6, window_bounds = array<i64: 1, 1, 1>}]} {
    %c0 = arith.constant 0 : index
    %c0_0 = arith.constant 0 : index
    %0 = vector.load %arg2[%c0, %c0_0] : memref<1x384xf32, #tpu.memory_space<vmem>>, vector<1x384xf32>
    %cst = arith.constant 0.000000e+00 : f32
    %1 = vector.broadcast %cst : f32 to vector<4x128xf32>
    %cst_1 = arith.constant 0.000000e+00 : f32
    %2 = vector.broadcast %cst_1 : f32 to vector<4x128xf32>
    %c0_2 = arith.constant 0 : index
    %c0_3 = arith.constant 0 : index
    %3 = vector.load %arg9[%c0_2, %c0_3] : memref<4x640xf32, #tpu.memory_space<vmem>>, vector<4x128xf32>
    tpu.vector_store %arg9[%c0_2, %c0_3], %1 {strides = array<i32>} : memref<4x640xf32, #tpu.memory_space<vmem>>, vector<4x128xf32>,
    %c0_4 = arith.constant 0 : index
    %c512 = arith.constant 512 : index
    %4 = vector.load %arg9[%c0_4, %c512] : memref<4x640xf32, #tpu.memory_space<vmem>>, vector<4x128xf32>
    tpu.vector_store %arg9[%c0_4, %c512], %2 {strides = array<i32>} : memref<4x640xf32, #tpu.memory_space<vmem>>, vector<4x128xf32>,
    %c0_5 = arith.constant 0 : index
    %c0_6 = arith.constant 0 : index
    %5 = vector.load %arg4[%c0_5, %c0_6] : memref<12x32xf32, #tpu.memory_space<vmem>>, vector<12x32xf32>
    %c0_7 = arith.constant 0 : index
    %c0_8 = arith.constant 0 : index
    %c0_9 = arith.constant 0 : index
    %6 = vector.load %arg1[%c0_7, %c0_8, %c0_9] : memref<1x32x384xf32, #tpu.memory_space<vmem>>, vector<1x32x384xf32>
    %7 = vector.shape_cast %6 : vector<1x32x384xf32> to vector<32x384xf32>
    %cst_10 = arith.constant dense<0.000000e+00> : vector<12x384xf32>
    %8 = tpu.matmul %5, %7, %cst_10 {dimension_numbers = #tpu.dot_dimension_numbers<[1], [0], [0], [1], [0, 0, 1, 1], [], []>} : vector<12x32xf32>, vector<32x384xf32>, vector<12x384xf32> -> vector<12x384xf32>
    %c0_11 = arith.constant 0 : index
    %c0_12 = arith.constant 0 : index
    %9 = vector.load %arg5[%c0_11, %c0_12] : memref<12x1xf32, #tpu.memory_space<vmem>>, vector<12x1xf32>
    %10 = vector.broadcast %9 : vector<12x1xf32> to vector<12x384xf32>
    %11 = arith.addf %8, %10 : vector<12x384xf32>
    %cst_13 = arith.constant 0.000000e+00 : f32
    %12 = vector.broadcast %cst_13 : f32 to vector<4x384xf32>
    %13 = vector.extract_strided_slice %11 {offsets = [0, 0], sizes = [4, 384], strides = [1, 1]} : vector<12x384xf32> to vector<4x384xf32>
    %cst_14 = arith.constant 0.000000e+00 : f32
    %14 = vector.broadcast %cst_14 : f32 to vector<4x384xf32>
    %15 = arith.cmpf ogt, %13, %14 : vector<4x384xf32>
    %cst_15 = arith.constant 2.000000e-01 : f32
    %16 = vector.broadcast %cst_15 : f32 to vector<4x384xf32>
    %17 = arith.mulf %16, %13 : vector<4x384xf32>
    %18 = arith.select %15, %13, %17 : vector<4x384xi1>, vector<4x384xf32>
    %19 = vector.broadcast %0 : vector<1x384xf32> to vector<4x384xf32>
    %20 = arith.mulf %18, %19 : vector<4x384xf32>
    %c0_16 = arith.constant 0 : index
    %c128 = arith.constant 128 : index
    %21 = vector.load %arg9[%c0_16, %c128] : memref<4x640xf32, #tpu.memory_space<vmem>>, vector<4x384xf32>
    tpu.vector_store %arg9[%c0_16, %c128], %20 {strides = array<i32>} : memref<4x640xf32, #tpu.memory_space<vmem>>, vector<4x384xf32>,
    %c0_17 = arith.constant 0 : index
    %c86 = arith.constant 86 : index
    %22 = vector.load %arg9[%c0_17, %c86] : memref<4x640xf32, #tpu.memory_space<vmem>>, vector<4x384xf32>
    %c0_18 = arith.constant 0 : index
    %c87 = arith.constant 87 : index
    %23 = vector.load %arg9[%c0_18, %c87] : memref<4x640xf32, #tpu.memory_space<vmem>>, vector<4x384xf32>
    %24 = tpu.concatenate %22, %23 in 0 : vector<4x384xf32>, vector<4x384xf32> -> vector<8x384xf32>
    %c0_19 = arith.constant 0 : index
    %c0_20 = arith.constant 0 : index
    %25 = vector.load %arg8[%c0_19, %c0_20] : memref<104x384xf32, #tpu.memory_space<vmem>>, vector<8x384xf32>
    tpu.vector_store %arg8[%c0_19, %c0_20], %24 {strides = array<i32>} : memref<104x384xf32, #tpu.memory_space<vmem>>, vector<8x384xf32>,
    %c0_21 = arith.constant 0 : index
    %c88 = arith.constant 88 : index
    %26 = vector.load %arg9[%c0_21, %c88] : memref<4x640xf32, #tpu.memory_space<vmem>>, vector<4x384xf32>
    %c0_22 = arith.constant 0 : index
    %c89 = arith.constant 89 : index
    %27 = vector.load %arg9[%c0_22, %c89] : memref<4x640xf32, #tpu.memory_space<vmem>>, vector<4x384xf32>
    %28 = tpu.concatenate %26, %27 in 0 : vector<4x384xf32>, vector<4x384xf32> -> vector<8x384xf32>
    %c8 = arith.constant 8 : index
    %c0_23 = arith.constant 0 : index
    %29 = vector.load %arg8[%c8, %c0_23] : memref<104x384xf32, #tpu.memory_space<vmem>>, vector<8x384xf32>
    tpu.vector_store %arg8[%c8, %c0_23], %28 {strides = array<i32>} : memref<104x384xf32, #tpu.memory_space<vmem>>, vector<8x384xf32>,
    %c0_24 = arith.constant 0 : index
    %c90 = arith.constant 90 : index
    %30 = vector.load %arg9[%c0_24, %c90] : memref<4x640xf32, #tpu.memory_space<vmem>>, vector<4x384xf32>
    %c0_25 = arith.constant 0 : index
    %c106 = arith.constant 106 : index
    %31 = vector.load %arg9[%c0_25, %c106] : memref<4x640xf32, #tpu.memory_space<vmem>>, vector<4x384xf32>
    %32 = tpu.concatenate %30, %31 in 0 : vector<4x384xf32>, vector<4x384xf32> -> vector<8x384xf32>
    %c16 = arith.constant 16 : index
    %c0_26 = arith.constant 0 : index
    %33 = vector.load %arg8[%c16, %c0_26] : memref<104x384xf32, #tpu.memory_space<vmem>>, vector<8x384xf32>
    tpu.vector_store %arg8[%c16, %c0_26], %32 {strides = array<i32>} : memref<104x384xf32, #tpu.memory_space<vmem>>, vector<8x384xf32>,
    %c0_27 = arith.constant 0 : index
    %c107 = arith.constant 107 : index
    %34 = vector.load %arg9[%c0_27, %c107] : memref<4x640xf32, #tpu.memory_space<vmem>>, vector<4x384xf32>
    %c0_28 = arith.constant 0 : index
    %c108 = arith.constant 108 : index
    %35 = vector.load %arg9[%c0_28, %c108] : memref<4x640xf32, #tpu.memory_space<vmem>>, vector<4x384xf32>
    %36 = tpu.concatenate %34, %35 in 0 : vector<4x384xf32>, vector<4x384xf32> -> vector<8x384xf32>
    %c24 = arith.constant 24 : index
    %c0_29 = arith.constant 0 : index
    %37 = vector.load %arg8[%c24, %c0_29] : memref<104x384xf32, #tpu.memory_space<vmem>>, vector<8x384xf32>
    tpu.vector_store %arg8[%c24, %c0_29], %36 {strides = array<i32>} : memref<104x384xf32, #tpu.memory_space<vmem>>, vector<8x384xf32>,
    %c0_30 = arith.constant 0 : index
    %c109 = arith.constant 109 : index
    %38 = vector.load %arg9[%c0_30, %c109] : memref<4x640xf32, #tpu.memory_space<vmem>>, vector<4x384xf32>
    %c0_31 = arith.constant 0 : index
    %c110 = arith.constant 110 : index
    %39 = vector.load %arg9[%c0_31, %c110] : memref<4x640xf32, #tpu.memory_space<vmem>>, vector<4x384xf32>
    %40 = tpu.concatenate %38, %39 in 0 : vector<4x384xf32>, vector<4x384xf32> -> vector<8x384xf32>
    %c32 = arith.constant 32 : index
    %c0_32 = arith.constant 0 : index
    %41 = vector.load %arg8[%c32, %c0_32] : memref<104x384xf32, #tpu.memory_space<vmem>>, vector<8x384xf32>
    tpu.vector_store %arg8[%c32, %c0_32], %40 {strides = array<i32>} : memref<104x384xf32, #tpu.memory_space<vmem>>, vector<8x384xf32>,
    %c0_33 = arith.constant 0 : index
    %c126 = arith.constant 126 : index
    %42 = vector.load %arg9[%c0_33, %c126] : memref<4x640xf32, #tpu.memory_space<vmem>>, vector<4x384xf32>
    %c0_34 = arith.constant 0 : index
    %c127 = arith.constant 127 : index
    %43 = vector.load %arg9[%c0_34, %c127] : memref<4x640xf32, #tpu.memory_space<vmem>>, vector<4x384xf32>
    %44 = tpu.concatenate %42, %43 in 0 : vector<4x384xf32>, vector<4x384xf32> -> vector<8x384xf32>
    %c40 = arith.constant 40 : index
    %c0_35 = arith.constant 0 : index
    %45 = vector.load %arg8[%c40, %c0_35] : memref<104x384xf32, #tpu.memory_space<vmem>>, vector<8x384xf32>
    tpu.vector_store %arg8[%c40, %c0_35], %44 {strides = array<i32>} : memref<104x384xf32, #tpu.memory_space<vmem>>, vector<8x384xf32>,
    %c0_36 = arith.constant 0 : index
    %c128_37 = arith.constant 128 : index
    %46 = vector.load %arg9[%c0_36, %c128_37] : memref<4x640xf32, #tpu.memory_space<vmem>>, vector<4x384xf32>
    %c0_38 = arith.constant 0 : index
    %c129 = arith.constant 129 : index
    %47 = vector.load %arg9[%c0_38, %c129] : memref<4x640xf32, #tpu.memory_space<vmem>>, vector<4x384xf32>
    %48 = tpu.concatenate %46, %47 in 0 : vector<4x384xf32>, vector<4x384xf32> -> vector<8x384xf32>
    %c48 = arith.constant 48 : index
    %c0_39 = arith.constant 0 : index
    %49 = vector.load %arg8[%c48, %c0_39] : memref<104x384xf32, #tpu.memory_space<vmem>>, vector<8x384xf32>
    tpu.vector_store %arg8[%c48, %c0_39], %48 {strides = array<i32>} : memref<104x384xf32, #tpu.memory_space<vmem>>, vector<8x384xf32>,
    %c0_40 = arith.constant 0 : index
    %c130 = arith.constant 130 : index
    %50 = vector.load %arg9[%c0_40, %c130] : memref<4x640xf32, #tpu.memory_space<vmem>>, vector<4x384xf32>
    %c0_41 = arith.constant 0 : index
    %c146 = arith.constant 146 : index
    %51 = vector.load %arg9[%c0_41, %c146] : memref<4x640xf32, #tpu.memory_space<vmem>>, vector<4x384xf32>
    %52 = tpu.concatenate %50, %51 in 0 : vector<4x384xf32>, vector<4x384xf32> -> vector<8x384xf32>
    %c56 = arith.constant 56 : index
    %c0_42 = arith.constant 0 : index
    %53 = vector.load %arg8[%c56, %c0_42] : memref<104x384xf32, #tpu.memory_space<vmem>>, vector<8x384xf32>
    tpu.vector_store %arg8[%c56, %c0_42], %52 {strides = array<i32>} : memref<104x384xf32, #tpu.memory_space<vmem>>, vector<8x384xf32>,
    %c0_43 = arith.constant 0 : index
    %c147 = arith.constant 147 : index
    %54 = vector.load %arg9[%c0_43, %c147] : memref<4x640xf32, #tpu.memory_space<vmem>>, vector<4x384xf32>
    %c0_44 = arith.constant 0 : index
    %c148 = arith.constant 148 : index
    %55 = vector.load %arg9[%c0_44, %c148] : memref<4x640xf32, #tpu.memory_space<vmem>>, vector<4x384xf32>
    %56 = tpu.concatenate %54, %55 in 0 : vector<4x384xf32>, vector<4x384xf32> -> vector<8x384xf32>
    %c64 = arith.constant 64 : index
    %c0_45 = arith.constant 0 : index
    %57 = vector.load %arg8[%c64, %c0_45] : memref<104x384xf32, #tpu.memory_space<vmem>>, vector<8x384xf32>
    tpu.vector_store %arg8[%c64, %c0_45], %56 {strides = array<i32>} : memref<104x384xf32, #tpu.memory_space<vmem>>, vector<8x384xf32>,
    %c0_46 = arith.constant 0 : index
    %c149 = arith.constant 149 : index
    %58 = vector.load %arg9[%c0_46, %c149] : memref<4x640xf32, #tpu.memory_space<vmem>>, vector<4x384xf32>
    %c0_47 = arith.constant 0 : index
    %c150 = arith.constant 150 : index
    %59 = vector.load %arg9[%c0_47, %c150] : memref<4x640xf32, #tpu.memory_space<vmem>>, vector<4x384xf32>
    %60 = tpu.concatenate %58, %59 in 0 : vector<4x384xf32>, vector<4x384xf32> -> vector<8x384xf32>
    %c72 = arith.constant 72 : index
    %c0_48 = arith.constant 0 : index
    %61 = vector.load %arg8[%c72, %c0_48] : memref<104x384xf32, #tpu.memory_space<vmem>>, vector<8x384xf32>
    tpu.vector_store %arg8[%c72, %c0_48], %60 {strides = array<i32>} : memref<104x384xf32, #tpu.memory_space<vmem>>, vector<8x384xf32>,
    %c0_49 = arith.constant 0 : index
    %c166 = arith.constant 166 : index
    %62 = vector.load %arg9[%c0_49, %c166] : memref<4x640xf32, #tpu.memory_space<vmem>>, vector<4x384xf32>
    %c0_50 = arith.constant 0 : index
    %c167 = arith.constant 167 : index
    %63 = vector.load %arg9[%c0_50, %c167] : memref<4x640xf32, #tpu.memory_space<vmem>>, vector<4x384xf32>
    %64 = tpu.concatenate %62, %63 in 0 : vector<4x384xf32>, vector<4x384xf32> -> vector<8x384xf32>
    %c80 = arith.constant 80 : index
    %c0_51 = arith.constant 0 : index
    %65 = vector.load %arg8[%c80, %c0_51] : memref<104x384xf32, #tpu.memory_space<vmem>>, vector<8x384xf32>
    tpu.vector_store %arg8[%c80, %c0_51], %64 {strides = array<i32>} : memref<104x384xf32, #tpu.memory_space<vmem>>, vector<8x384xf32>,
    %c0_52 = arith.constant 0 : index
    %c168 = arith.constant 168 : index
    %66 = vector.load %arg9[%c0_52, %c168] : memref<4x640xf32, #tpu.memory_space<vmem>>, vector<4x384xf32>
    %c0_53 = arith.constant 0 : index
    %c169 = arith.constant 169 : index
    %67 = vector.load %arg9[%c0_53, %c169] : memref<4x640xf32, #tpu.memory_space<vmem>>, vector<4x384xf32>
    %68 = tpu.concatenate %66, %67 in 0 : vector<4x384xf32>, vector<4x384xf32> -> vector<8x384xf32>
    %c88_54 = arith.constant 88 : index
    %c0_55 = arith.constant 0 : index
    %69 = vector.load %arg8[%c88_54, %c0_55] : memref<104x384xf32, #tpu.memory_space<vmem>>, vector<8x384xf32>
    tpu.vector_store %arg8[%c88_54, %c0_55], %68 {strides = array<i32>} : memref<104x384xf32, #tpu.memory_space<vmem>>, vector<8x384xf32>,
    %c0_56 = arith.constant 0 : index
    %c170 = arith.constant 170 : index
    %70 = vector.load %arg9[%c0_56, %c170] : memref<4x640xf32, #tpu.memory_space<vmem>>, vector<4x384xf32>
    %71 = tpu.concatenate %70, %12 in 0 : vector<4x384xf32>, vector<4x384xf32> -> vector<8x384xf32>
    %c96 = arith.constant 96 : index
    %c0_57 = arith.constant 0 : index
    %72 = vector.load %arg8[%c96, %c0_57] : memref<104x384xf32, #tpu.memory_space<vmem>>, vector<8x384xf32>
    tpu.vector_store %arg8[%c96, %c0_57], %71 {strides = array<i32>} : memref<104x384xf32, #tpu.memory_space<vmem>>, vector<8x384xf32>,
    %c0_58 = arith.constant 0 : index
    %c0_59 = arith.constant 0 : index
    %c0_60 = arith.constant 0 : index
    %73 = vector.load %arg6[%c0_58, %c0_59, %c0_60] : memref<2x4x104xf32, #tpu.memory_space<vmem>>, vector<1x4x104xf32>
    %74 = vector.shape_cast %73 : vector<1x4x104xf32> to vector<4x104xf32>
    %c0_61 = arith.constant 0 : index
    %c0_62 = arith.constant 0 : index
    %75 = vector.load %arg8[%c0_61, %c0_62] : memref<104x384xf32, #tpu.memory_space<vmem>>, vector<104x384xf32>
    %cst_63 = arith.constant dense<0.000000e+00> : vector<4x384xf32>
    %76 = tpu.matmul %74, %75, %cst_63 {dimension_numbers = #tpu.dot_dimension_numbers<[1], [0], [0], [1], [0, 0, 1, 1], [], []>} : vector<4x104xf32>, vector<104x384xf32>, vector<4x384xf32> -> vector<4x384xf32>
    %77 = vector.extract_strided_slice %11 {offsets = [4, 0], sizes = [4, 384], strides = [1, 1]} : vector<12x384xf32> to vector<4x384xf32>
    %78 = arith.addf %76, %77 : vector<4x384xf32>
    %cst_64 = arith.constant 0.000000e+00 : f32
    %79 = vector.broadcast %cst_64 : f32 to vector<4x384xf32>
    %80 = arith.cmpf ogt, %78, %79 : vector<4x384xf32>
    %cst_65 = arith.constant 2.000000e-01 : f32
    %81 = vector.broadcast %cst_65 : f32 to vector<4x384xf32>
    %82 = arith.mulf %81, %78 : vector<4x384xf32>
    %83 = arith.select %80, %78, %82 : vector<4x384xi1>, vector<4x384xf32>
    %84 = vector.broadcast %0 : vector<1x384xf32> to vector<4x384xf32>
    %85 = arith.mulf %83, %84 : vector<4x384xf32>
    %c0_66 = arith.constant 0 : index
    %c128_67 = arith.constant 128 : index
    %86 = vector.load %arg9[%c0_66, %c128_67] : memref<4x640xf32, #tpu.memory_space<vmem>>, vector<4x384xf32>
    tpu.vector_store %arg9[%c0_66, %c128_67], %85 {strides = array<i32>} : memref<4x640xf32, #tpu.memory_space<vmem>>, vector<4x384xf32>,
    %c0_68 = arith.constant 0 : index
    %c86_69 = arith.constant 86 : index
    %87 = vector.load %arg9[%c0_68, %c86_69] : memref<4x640xf32, #tpu.memory_space<vmem>>, vector<4x384xf32>
    %c0_70 = arith.constant 0 : index
    %c87_71 = arith.constant 87 : index
    %88 = vector.load %arg9[%c0_70, %c87_71] : memref<4x640xf32, #tpu.memory_space<vmem>>, vector<4x384xf32>
    %89 = tpu.concatenate %87, %88 in 0 : vector<4x384xf32>, vector<4x384xf32> -> vector<8x384xf32>
    %c0_72 = arith.constant 0 : index
    %c0_73 = arith.constant 0 : index
    %90 = vector.load %arg8[%c0_72, %c0_73] : memref<104x384xf32, #tpu.memory_space<vmem>>, vector<8x384xf32>
    tpu.vector_store %arg8[%c0_72, %c0_73], %89 {strides = array<i32>} : memref<104x384xf32, #tpu.memory_space<vmem>>, vector<8x384xf32>,
    %c0_74 = arith.constant 0 : index
    %c88_75 = arith.constant 88 : index
    %91 = vector.load %arg9[%c0_74, %c88_75] : memref<4x640xf32, #tpu.memory_space<vmem>>, vector<4x384xf32>
    %c0_76 = arith.constant 0 : index
    %c89_77 = arith.constant 89 : index
    %92 = vector.load %arg9[%c0_76, %c89_77] : memref<4x640xf32, #tpu.memory_space<vmem>>, vector<4x384xf32>
    %93 = tpu.concatenate %91, %92 in 0 : vector<4x384xf32>, vector<4x384xf32> -> vector<8x384xf32>
    %c8_78 = arith.constant 8 : index
    %c0_79 = arith.constant 0 : index
    %94 = vector.load %arg8[%c8_78, %c0_79] : memref<104x384xf32, #tpu.memory_space<vmem>>, vector<8x384xf32>
    tpu.vector_store %arg8[%c8_78, %c0_79], %93 {strides = array<i32>} : memref<104x384xf32, #tpu.memory_space<vmem>>, vector<8x384xf32>,
    %c0_80 = arith.constant 0 : index
    %c90_81 = arith.constant 90 : index
    %95 = vector.load %arg9[%c0_80, %c90_81] : memref<4x640xf32, #tpu.memory_space<vmem>>, vector<4x384xf32>
    %c0_82 = arith.constant 0 : index
    %c106_83 = arith.constant 106 : index
    %96 = vector.load %arg9[%c0_82, %c106_83] : memref<4x640xf32, #tpu.memory_space<vmem>>, vector<4x384xf32>
    %97 = tpu.concatenate %95, %96 in 0 : vector<4x384xf32>, vector<4x384xf32> -> vector<8x384xf32>
    %c16_84 = arith.constant 16 : index
    %c0_85 = arith.constant 0 : index
    %98 = vector.load %arg8[%c16_84, %c0_85] : memref<104x384xf32, #tpu.memory_space<vmem>>, vector<8x384xf32>
    tpu.vector_store %arg8[%c16_84, %c0_85], %97 {strides = array<i32>} : memref<104x384xf32, #tpu.memory_space<vmem>>, vector<8x384xf32>,
    %c0_86 = arith.constant 0 : index
    %c107_87 = arith.constant 107 : index
    %99 = vector.load %arg9[%c0_86, %c107_87] : memref<4x640xf32, #tpu.memory_space<vmem>>, vector<4x384xf32>
    %c0_88 = arith.constant 0 : index
    %c108_89 = arith.constant 108 : index
    %100 = vector.load %arg9[%c0_88, %c108_89] : memref<4x640xf32, #tpu.memory_space<vmem>>, vector<4x384xf32>
    %101 = tpu.concatenate %99, %100 in 0 : vector<4x384xf32>, vector<4x384xf32> -> vector<8x384xf32>
    %c24_90 = arith.constant 24 : index
    %c0_91 = arith.constant 0 : index
    %102 = vector.load %arg8[%c24_90, %c0_91] : memref<104x384xf32, #tpu.memory_space<vmem>>, vector<8x384xf32>
    tpu.vector_store %arg8[%c24_90, %c0_91], %101 {strides = array<i32>} : memref<104x384xf32, #tpu.memory_space<vmem>>, vector<8x384xf32>,
    %c0_92 = arith.constant 0 : index
    %c109_93 = arith.constant 109 : index
    %103 = vector.load %arg9[%c0_92, %c109_93] : memref<4x640xf32, #tpu.memory_space<vmem>>, vector<4x384xf32>
    %c0_94 = arith.constant 0 : index
    %c110_95 = arith.constant 110 : index
    %104 = vector.load %arg9[%c0_94, %c110_95] : memref<4x640xf32, #tpu.memory_space<vmem>>, vector<4x384xf32>
    %105 = tpu.concatenate %103, %104 in 0 : vector<4x384xf32>, vector<4x384xf32> -> vector<8x384xf32>
    %c32_96 = arith.constant 32 : index
    %c0_97 = arith.constant 0 : index
    %106 = vector.load %arg8[%c32_96, %c0_97] : memref<104x384xf32, #tpu.memory_space<vmem>>, vector<8x384xf32>
    tpu.vector_store %arg8[%c32_96, %c0_97], %105 {strides = array<i32>} : memref<104x384xf32, #tpu.memory_space<vmem>>, vector<8x384xf32>,
    %c0_98 = arith.constant 0 : index
    %c126_99 = arith.constant 126 : index
    %107 = vector.load %arg9[%c0_98, %c126_99] : memref<4x640xf32, #tpu.memory_space<vmem>>, vector<4x384xf32>
    %c0_100 = arith.constant 0 : index
    %c127_101 = arith.constant 127 : index
    %108 = vector.load %arg9[%c0_100, %c127_101] : memref<4x640xf32, #tpu.memory_space<vmem>>, vector<4x384xf32>
    %109 = tpu.concatenate %107, %108 in 0 : vector<4x384xf32>, vector<4x384xf32> -> vector<8x384xf32>
    %c40_102 = arith.constant 40 : index
    %c0_103 = arith.constant 0 : index
    %110 = vector.load %arg8[%c40_102, %c0_103] : memref<104x384xf32, #tpu.memory_space<vmem>>, vector<8x384xf32>
    tpu.vector_store %arg8[%c40_102, %c0_103], %109 {strides = array<i32>} : memref<104x384xf32, #tpu.memory_space<vmem>>, vector<8x384xf32>,
    %c0_104 = arith.constant 0 : index
    %c128_105 = arith.constant 128 : index
    %111 = vector.load %arg9[%c0_104, %c128_105] : memref<4x640xf32, #tpu.memory_space<vmem>>, vector<4x384xf32>
    %c0_106 = arith.constant 0 : index
    %c129_107 = arith.constant 129 : index
    %112 = vector.load %arg9[%c0_106, %c129_107] : memref<4x640xf32, #tpu.memory_space<vmem>>, vector<4x384xf32>
    %113 = tpu.concatenate %111, %112 in 0 : vector<4x384xf32>, vector<4x384xf32> -> vector<8x384xf32>
    %c48_108 = arith.constant 48 : index
    %c0_109 = arith.constant 0 : index
    %114 = vector.load %arg8[%c48_108, %c0_109] : memref<104x384xf32, #tpu.memory_space<vmem>>, vector<8x384xf32>
    tpu.vector_store %arg8[%c48_108, %c0_109], %113 {strides = array<i32>} : memref<104x384xf32, #tpu.memory_space<vmem>>, vector<8x384xf32>,
    %c0_110 = arith.constant 0 : index
    %c130_111 = arith.constant 130 : index
    %115 = vector.load %arg9[%c0_110, %c130_111] : memref<4x640xf32, #tpu.memory_space<vmem>>, vector<4x384xf32>
    %c0_112 = arith.constant 0 : index
    %c146_113 = arith.constant 146 : index
    %116 = vector.load %arg9[%c0_112, %c146_113] : memref<4x640xf32, #tpu.memory_space<vmem>>, vector<4x384xf32>
    %117 = tpu.concatenate %115, %116 in 0 : vector<4x384xf32>, vector<4x384xf32> -> vector<8x384xf32>
    %c56_114 = arith.constant 56 : index
    %c0_115 = arith.constant 0 : index
    %118 = vector.load %arg8[%c56_114, %c0_115] : memref<104x384xf32, #tpu.memory_space<vmem>>, vector<8x384xf32>
    tpu.vector_store %arg8[%c56_114, %c0_115], %117 {strides = array<i32>} : memref<104x384xf32, #tpu.memory_space<vmem>>, vector<8x384xf32>,
    %c0_116 = arith.constant 0 : index
    %c147_117 = arith.constant 147 : index
    %119 = vector.load %arg9[%c0_116, %c147_117] : memref<4x640xf32, #tpu.memory_space<vmem>>, vector<4x384xf32>
    %c0_118 = arith.constant 0 : index
    %c148_119 = arith.constant 148 : index
    %120 = vector.load %arg9[%c0_118, %c148_119] : memref<4x640xf32, #tpu.memory_space<vmem>>, vector<4x384xf32>
    %121 = tpu.concatenate %119, %120 in 0 : vector<4x384xf32>, vector<4x384xf32> -> vector<8x384xf32>
    %c64_120 = arith.constant 64 : index
    %c0_121 = arith.constant 0 : index
    %122 = vector.load %arg8[%c64_120, %c0_121] : memref<104x384xf32, #tpu.memory_space<vmem>>, vector<8x384xf32>
    tpu.vector_store %arg8[%c64_120, %c0_121], %121 {strides = array<i32>} : memref<104x384xf32, #tpu.memory_space<vmem>>, vector<8x384xf32>,
    %c0_122 = arith.constant 0 : index
    %c149_123 = arith.constant 149 : index
    %123 = vector.load %arg9[%c0_122, %c149_123] : memref<4x640xf32, #tpu.memory_space<vmem>>, vector<4x384xf32>
    %c0_124 = arith.constant 0 : index
    %c150_125 = arith.constant 150 : index
    %124 = vector.load %arg9[%c0_124, %c150_125] : memref<4x640xf32, #tpu.memory_space<vmem>>, vector<4x384xf32>
    %125 = tpu.concatenate %123, %124 in 0 : vector<4x384xf32>, vector<4x384xf32> -> vector<8x384xf32>
    %c72_126 = arith.constant 72 : index
    %c0_127 = arith.constant 0 : index
    %126 = vector.load %arg8[%c72_126, %c0_127] : memref<104x384xf32, #tpu.memory_space<vmem>>, vector<8x384xf32>
    tpu.vector_store %arg8[%c72_126, %c0_127], %125 {strides = array<i32>} : memref<104x384xf32, #tpu.memory_space<vmem>>, vector<8x384xf32>,
    %c0_128 = arith.constant 0 : index
    %c166_129 = arith.constant 166 : index
    %127 = vector.load %arg9[%c0_128, %c166_129] : memref<4x640xf32, #tpu.memory_space<vmem>>, vector<4x384xf32>
    %c0_130 = arith.constant 0 : index
    %c167_131 = arith.constant 167 : index
    %128 = vector.load %arg9[%c0_130, %c167_131] : memref<4x640xf32, #tpu.memory_space<vmem>>, vector<4x384xf32>
    %129 = tpu.concatenate %127, %128 in 0 : vector<4x384xf32>, vector<4x384xf32> -> vector<8x384xf32>
    %c80_132 = arith.constant 80 : index
    %c0_133 = arith.constant 0 : index
    %130 = vector.load %arg8[%c80_132, %c0_133] : memref<104x384xf32, #tpu.memory_space<vmem>>, vector<8x384xf32>
    tpu.vector_store %arg8[%c80_132, %c0_133], %129 {strides = array<i32>} : memref<104x384xf32, #tpu.memory_space<vmem>>, vector<8x384xf32>,
    %c0_134 = arith.constant 0 : index
    %c168_135 = arith.constant 168 : index
    %131 = vector.load %arg9[%c0_134, %c168_135] : memref<4x640xf32, #tpu.memory_space<vmem>>, vector<4x384xf32>
    %c0_136 = arith.constant 0 : index
    %c169_137 = arith.constant 169 : index
    %132 = vector.load %arg9[%c0_136, %c169_137] : memref<4x640xf32, #tpu.memory_space<vmem>>, vector<4x384xf32>
    %133 = tpu.concatenate %131, %132 in 0 : vector<4x384xf32>, vector<4x384xf32> -> vector<8x384xf32>
    %c88_138 = arith.constant 88 : index
    %c0_139 = arith.constant 0 : index
    %134 = vector.load %arg8[%c88_138, %c0_139] : memref<104x384xf32, #tpu.memory_space<vmem>>, vector<8x384xf32>
    tpu.vector_store %arg8[%c88_138, %c0_139], %133 {strides = array<i32>} : memref<104x384xf32, #tpu.memory_space<vmem>>, vector<8x384xf32>,
    %c0_140 = arith.constant 0 : index
    %c170_141 = arith.constant 170 : index
    %135 = vector.load %arg9[%c0_140, %c170_141] : memref<4x640xf32, #tpu.memory_space<vmem>>, vector<4x384xf32>
    %136 = tpu.concatenate %135, %12 in 0 : vector<4x384xf32>, vector<4x384xf32> -> vector<8x384xf32>
    %c96_142 = arith.constant 96 : index
    %c0_143 = arith.constant 0 : index
    %137 = vector.load %arg8[%c96_142, %c0_143] : memref<104x384xf32, #tpu.memory_space<vmem>>, vector<8x384xf32>
    tpu.vector_store %arg8[%c96_142, %c0_143], %136 {strides = array<i32>} : memref<104x384xf32, #tpu.memory_space<vmem>>, vector<8x384xf32>,
    %c1 = arith.constant 1 : index
    %c0_144 = arith.constant 0 : index
    %c0_145 = arith.constant 0 : index
    %138 = vector.load %arg6[%c1, %c0_144, %c0_145] : memref<2x4x104xf32, #tpu.memory_space<vmem>>, vector<1x4x104xf32>
    %139 = vector.shape_cast %138 : vector<1x4x104xf32> to vector<4x104xf32>
    %c0_146 = arith.constant 0 : index
    %c0_147 = arith.constant 0 : index
    %140 = vector.load %arg8[%c0_146, %c0_147] : memref<104x384xf32, #tpu.memory_space<vmem>>, vector<104x384xf32>
    %cst_148 = arith.constant dense<0.000000e+00> : vector<4x384xf32>
    %141 = tpu.matmul %139, %140, %cst_148 {dimension_numbers = #tpu.dot_dimension_numbers<[1], [0], [0], [1], [0, 0, 1, 1], [], []>} : vector<4x104xf32>, vector<104x384xf32>, vector<4x384xf32> -> vector<4x384xf32>
    %142 = vector.extract_strided_slice %11 {offsets = [8, 0], sizes = [4, 384], strides = [1, 1]} : vector<12x384xf32> to vector<4x384xf32>
    %143 = arith.addf %141, %142 : vector<4x384xf32>
    %cst_149 = arith.constant 0.000000e+00 : f32
    %144 = vector.broadcast %cst_149 : f32 to vector<4x384xf32>
    %145 = arith.cmpf ogt, %143, %144 : vector<4x384xf32>
    %cst_150 = arith.constant 2.000000e-01 : f32
    %146 = vector.broadcast %cst_150 : f32 to vector<4x384xf32>
    %147 = arith.mulf %146, %143 : vector<4x384xf32>
    %148 = arith.select %145, %143, %147 : vector<4x384xi1>, vector<4x384xf32>
    %149 = vector.broadcast %0 : vector<1x384xf32> to vector<4x384xf32>
    %150 = arith.mulf %148, %149 : vector<4x384xf32>
    %c0_151 = arith.constant 0 : index
    %c0_152 = arith.constant 0 : index
    %151 = vector.load %arg3[%c0_151, %c0_152] : memref<4x384xf32, #tpu.memory_space<vmem>>, vector<4x384xf32>
    %152 = arith.mulf %150, %151 : vector<4x384xf32>
    %153 = vector.shape_cast %152 : vector<4x384xf32> to vector<1x4x384xf32>
    %cst_153 = arith.constant dense<0.000000e+00> : vector<1xf32>
    %154 = vector.multi_reduction <add>, %153, %cst_153 [1, 2] : vector<1x4x384xf32> to vector<1xf32>
    %155 = vector.shape_cast %154 : vector<1xf32> to vector<1x1x1xf32>
    %156 = vector.extract %155[0, 0, 0] : f32 from vector<1x1x1xf32>
    %cst_154 = arith.constant 1.000000e+00 : f32
    %157 = vector.broadcast %cst_154 : f32 to vector<1x1x1xf32>
    %158 = vector.broadcast %156 : f32 to vector<1x1x1xf32>
    %159 = arith.mulf %158, %157 : vector<1x1x1xf32>
    %c0_155 = arith.constant 0 : index
    %c0_156 = arith.constant 0 : index
    %c0_157 = arith.constant 0 : index
    %160 = vector.load %arg7[%c0_155, %c0_156, %c0_157] : memref<1x1x1xf32, #tpu.memory_space<vmem>>, vector<1x1x1xf32>
    tpu.vector_store %arg7[%c0_155, %c0_156, %c0_157], %159 {strides = array<i32>} : memref<1x1x1xf32, #tpu.memory_space<vmem>>, vector<1x1x1xf32>,
    return
  }
  func.func @transform_0(%arg0: i32) -> (i32, i32, i32) {
    %c0_i32 = arith.constant 0 : i32
    %c0_i32_0 = arith.constant 0 : i32
    %c0_i32_1 = arith.constant 0 : i32
    return %arg0, %c0_i32, %c0_i32_0 : i32, i32, i32
  }
  func.func @transform_1(%arg0: i32) -> (i32, i32) {
    %c0_i32 = arith.constant 0 : i32
    %c0_i32_0 = arith.constant 0 : i32
    %c0_i32_1 = arith.constant 0 : i32
    return %c0_i32, %c0_i32_0 : i32, i32
  }
  func.func @transform_2(%arg0: i32) -> (i32, i32) {
    %c0_i32 = arith.constant 0 : i32
    %c0_i32_0 = arith.constant 0 : i32
    %c0_i32_1 = arith.constant 0 : i32
    return %c0_i32, %c0_i32_0 : i32, i32
  }
  func.func @transform_3(%arg0: i32) -> (i32, i32) {
    %c0_i32 = arith.constant 0 : i32
    %c0_i32_0 = arith.constant 0 : i32
    %c0_i32_1 = arith.constant 0 : i32
    return %c0_i32, %c0_i32_0 : i32, i32
  }
  func.func @transform_4(%arg0: i32) -> (i32, i32) {
    %c0_i32 = arith.constant 0 : i32
    %c0_i32_0 = arith.constant 0 : i32
    %c0_i32_1 = arith.constant 0 : i32
    return %c0_i32, %c0_i32_0 : i32, i32
  }
  func.func @transform_5(%arg0: i32) -> (i32, i32, i32) {
    %c0_i32 = arith.constant 0 : i32
    %c0_i32_0 = arith.constant 0 : i32
    %c0_i32_1 = arith.constant 0 : i32
    %c0_i32_2 = arith.constant 0 : i32
    return %c0_i32, %c0_i32_0, %c0_i32_1 : i32, i32, i32
  }
  func.func @transform_6(%arg0: i32) -> (i32, i32, i32) {
    %c0_i32 = arith.constant 0 : i32
    %c0_i32_0 = arith.constant 0 : i32
    %c0_i32_1 = arith.constant 0 : i32
    return %arg0, %c0_i32, %c0_i32_0 : i32, i32, i32
  }
}

</mosaic_0001>

<bundles_post_ra>
// kernel: icnn_forward_pallas.1
= control target key start
LH: loop header
LB: loop body
LE: loop exit
PB: predicated region body
PF: predicated region fallthrough
CT: control target
= control target key end

     0   :  { %s2987_s21 = smov 0   ;;  %s3890_s0 = inlined_call_operand.vmem [shape: f32[2,32,384], index: 0, kind: input, shape index: {}]   ;;  %s3891_s1 = inlined_call_operand.vmem [shape: f32[1,384], index: 1, kind: input, shape index: {}]   ;;  %s3892_s2 = inlined_call_operand.vmem [shape: f32[4,384], index: 2, kind: input, shape index: {}]   ;;  %s3893_s3 = inlined_call_operand.vmem [shape: f32[12,32], index: 3, kind: input, shape index: {}]   ;;  %s3894_s4 = inlined_call_operand.vmem [shape: f32[12,1], index: 4, kind: input, shape index: {}]   ;;  %s3895_s5 = inlined_call_operand.vmem [shape: f32[2,4,104], index: 5, kind: input, shape index: {}]   ;;  %s3896_s6 = inlined_call_operand.vmem [shape: f32[2,1,1], index: 6, kind: output, shape index: {}]  }
   0x1 LB: > { %s2194_s22 = sadd.s32 4294967295, %s2932_s21   ;;  %p2198_p0 = scmp.ge.s32.totalorder %s2932_s21, 1  ;;  %s2932_s21 = sphi %s2987_s21, %s16_s21  }
   0x2   : > { %p212_p1 = scmp.lt.s32.totalorder %s2932_s21, 3 }
   0x4   : > { %p213_p2 = pnand %p2198_p0, %p212_p1 }
   0x5   : > { %p240_p3 = scmp.lt.s32.totalorder (!%p213_p2), %s2194_s22, 1  ;;  %v251_v0 = vld [vmem:[%s3893_s3] sm:$0xff] (!%p213_p2)  ;;  %vm277_vm0 = vcmask (!%p213_p2), 261120   ;;  %v2934_v1 = vmov (!%p213_p2), 0.0   ;;  %v2935_v3 = vmov (!%p213_p2), 0   ;;  %v446_v23 = vlaneseq (!%p213_p2)  ;;  %s2936_s11 = smov (!%p213_p2), 127  }
   0x6   : > { %216 = sbr.rel (%p213_p2) target bundleno = 1560 (0x618), region = 44  ;;  %348 = vmatprep.mubr.f32.mxu0 (!%p213_p2), %v2934_v1  ;;  %249 = vst [vmem:[#allocation3] sm:$0xf] (!%p213_p2), %v2934_v1  ;;  %250 = vst [vmem:[#allocation3 + $0x10] sm:$0xf] (!%p213_p2), %v2934_v1  ;;  %2253 = vmatprep.mubr.msk.f32.mxu1 (!%p213_p2), %vm277_vm0, %v251_v0  ;;  %v265_v2 = vld [vmem:[%s3894_s4] sm:$0xff] (!%p213_p2) }
   0x7   : > { %2447 = vset.pattern.permute.xlu0 (!%p213_p2), %v2935_v3  ;;  %2908 = vset.pattern.permute.xlu1 (!%p213_p2), %v2935_v3  ;;  %v252_v22 = vld [vmem:[%s3893_s3 + $0x8] sm:$0xf] (!%p213_p2)  ;;  %v447_v24 = vshrl.u32 (!%p213_p2), %v446_v23, 7  ;;  %v248_v27 = vld [vmem:[%s3891_s1] sm:$0x7] (!%p213_p2)  ;;  %s2937_s12 = smov (!%p213_p2), 112  }
   0x8   : > { %269 = vperm.xlu0 (!%p213_p2), %2447, %v265_v2   ;;  %vm592_vm4 = vcmask (!%p213_p2), 916480   ;;  %vm488_vm5 = vcmask (!%p213_p2), 1039360   ;;  %vm496_vm6 = vcmask (!%p213_p2), 1043456   ;;  %s2938_s13 = smov (!%p213_p2), 126   ;;  %s2939_s14 = smov (!%p213_p2), 107   ;;  %vm2950_vm7 = vmmov (!%p213_p2), 0  }
   0x9   : > { %v448_v26 = vsub.s32 (!%p213_p2), 0, %v447_v24  ;;  %v452_v28 = vsub.s32 (!%p213_p2), 1, %v447_v24  ;;  %v456_v30 = vsub.s32 (!%p213_p2), 2, %v447_v24  ;;  %s2940_s15 = smov (!%p213_p2), 109   ;;  %s2942_s16 = smov (!%p213_p2), 40   ;;  %vm564_vm8 = vcmask (!%p213_p2), 326656  }
   0xa   : > { %s2943_s17 = smov (!%p213_p2), 42   ;;  %s2944_s18 = smov (!%p213_p2), 21   ;;  %vm513_vm9 = vcmask (!%p213_p2), 343040   ;;  %vm667_vm10 = vcmask (!%p213_p2), 171008   ;;  %vm616_vm11 = vcmask (!%p213_p2), 310272   ;;  %vm718_vm12 = vcmask (!%p213_p2), 154624  }
   0xb   : > { %v3026_v34 = vrot.slane (!%p213_p2), %v248_v27, %v448_v26  ;;  %v3032_v38 = vrot.slane (!%p213_p2), %v248_v27, %v452_v28  ;;  %v3038_v41 = vrot.slane (!%p213_p2), %v248_v27, %v456_v30  ;;  %s2945_s19 = smov (!%p213_p2), 38   ;;  %s2946_s20 = smov (!%p213_p2), 2   ;;  %vm769_vm13 = vcmask (!%p213_p2), 15360  }
   0xc   : > { %s2947_s23 = smov (!%p213_p2), 19   ;;  %s2948_s24 = smov (!%p213_p2), 88   ;;  %vm851_vm14 = vcmask (!%p213_p2), 1031168   ;;  %vm902_vm15 = vcmask (!%p213_p2), 891904  }
   0xd   : > { %s3913_s22 = smov (!%p240_p3, %s2194_s22), 1  ;;  %s2949_s25 = smov 90  }
   0xe   : > { %s2418_s27 = smul.u32 96, %s3913_s22  ;;  %s2951_s26 = smov 86  }
  0x10   : > { %s244_s30 = scalar_lea.vmem %s3890_s0, %s2418_s27 }
  0x11   : > { %v254_v4 = vld [vmem:[%s244_s30 + $0x8] sm:$0xff]  ;;  %v257_v5 = vld [vmem:[%s244_s30 + $0x20] sm:$0xff]  ;;  %v255_v6 = vld [vmem:[%s244_s30 + $0x10] sm:$0xff] }
  0x12   : > { %v2314_v7 = vpack.c.bf16 %v257_v5, %v254_v4  ;;  %v258_v8 = vld [vmem:[%s244_s30 + $0x28] sm:$0xff]  ;;  %v253_v9 = vld [vmem:[%s244_s30] sm:$0xff]  ;;  %v256_v10 = vld [vmem:[%s244_s30 + $0x18] sm:$0xff] }
  0x13   : > { %v2322_v11 = vpack.c.bf16 %v258_v8, %v255_v6  ;;  %v2316_v12 = vpack.c.bf16 %v256_v10, %v253_v9  ;;  %v260_v13 = vld [vmem:[%s244_s30 + $0x38] sm:$0xff]  ;;  %v263_v14 = vld [vmem:[%s244_s30 + $0x50] sm:$0xff]  ;;  %v261_v15 = vld [vmem:[%s244_s30 + $0x40] sm:$0xff] }
  0x14   : > { %2315 = vmatprep.subr.bf16.mxu0 %v2314_v7  ;;  %v2318_v16 = vpack.c.bf16 %v263_v14, %v260_v13  ;;  %v264_v17 = vld [vmem:[%s244_s30 + $0x58] sm:$0xff]  ;;  %v259_v18 = vld [vmem:[%s244_s30 + $0x30] sm:$0xff]  ;;  %v262_v19 = vld [vmem:[%s244_s30 + $0x48] sm:$0xff] }
  0x15   : > { %2323 = vmatprep.subr.bf16.mxu1 %v2322_v11  ;;  %2317 = vmatpush1.bf16.msra.mxu0 %v2316_v12  ;;  %v2326_v20 = vpack.c.bf16 %v264_v17, %v261_v15  ;;  %v2320_v21 = vpack.c.bf16 %v262_v19, %v259_v18 }
  0x16   : > { %2325 = vmatpush3.bf16.msra.mxu1 %v2322_v11  ;;  %2319 = vmatprep.subr.bf16.mxu0 %v2318_v16 }
  0x17   : > { %2327 = vmatprep.subr.bf16.mxu1 %v2326_v20 }
  0x19   : > { %2321 = vmatpush1.bf16.msra.mxu0 %v2320_v21 }
  0x1a   : > { %2329 = vmatpush3.bf16.msra.mxu1 %v2326_v20 }
  0x1c   : > { %2200 = vmatmul.mubr.msk.f32.vlgmr.msra.gmra.mrb[0].mxu0 %vm277_vm0, %v251_v0 }
  0x1d   : > { %2254 = vmatmul.mubr.msk.f32.vlgmr.msra.gmra.mrb[0].mxu1 %vm277_vm0, %v252_v22  ;;  %354 = vmatprep.mubr.f32.mxu0 %v2934_v1 }
  0x1e   : > { %2282 = vmatprep.mubr.msk.f32.mxu1 %vm2950_vm7, %v2934_v1 }
  0x20   : > { %2201 = vmatmul.mubr.msk.f32.gmra.mrb[2].mxu0 %vm277_vm0, %v252_v22  ;;  %vm953_vm0 = vcmask 875520  }
  0x21   : > { %1216 = vmatprep.mubr.f32.mxu0 %v2934_v1 }
  0x87   : > { %v270_v25 = vpop.permute.xlu0 %269 }
  0xef   : > { %v350_v29 = vpop.f32.mrb[0].mxu0 }
  0xf0   : > { %v3022_v31 = vadd.f32 %v350_v29, %v270_v25  ;;  %v3024_v32 = vpop.f32.mrb[0].mxu1  ;;  %v352_v33 = vpop.f32.mrb[1].mxu0 }
  0xf1   : > { %v3028_v35 = vadd.f32 %v352_v33, %v270_v25  ;;  %v427_v36 = vpop.f32.mrb[1].mxu1 }
  0xf2   : > { %vm436_vm1 = vcmp.gt.f32.partialorder %v3022_v31, 0.0  ;;  %v439_v37 = vmul.f32 0.2, %v3022_v31  ;;  %v3034_v39 = vadd.f32 %v427_v36, %v270_v25 }
  0xf3   : > { %vm437_vm2 = vcmp.gt.f32.partialorder %v3028_v35, 0.0  ;;  %v440_v40 = vmul.f32 0.2, %v3028_v35 }
  0xf4   : > { %v442_v42 = vsel %vm436_vm1, %v3022_v31, %v439_v37  ;;  %vm438_vm3 = vcmp.gt.f32.partialorder %v3034_v39, 0.0  ;;  %v441_v43 = vmul.f32 0.2, %v3034_v39  ;;  %vm3900_vm1 = vcmask 736256  }
  0xf5   : > { %v461_v44 = vmul.f32 %v3026_v34, %v442_v42  ;;  %v443_v45 = vsel %vm437_vm2, %v3028_v35, %v440_v40  ;;  %vm3897_vm2 = vcmask 719872  }
  0xf6   : > { %v3046_v46 = vmul.f32 %v3032_v38, %v443_v45  ;;  %v444_v47 = vsel %vm438_vm3, %v3034_v39, %v441_v43  ;;  %vm3899_vm3 = vcmask 703488  }
  0xf7   : > { %v463_v48 = vmul.f32 %v3038_v41, %v444_v47  ;;  %v2922_v63 = vcombine.low %v461_v44, %v461_v44 }
  0xf8   : > { %v3051_v49 = vcombine.low %v461_v44, %v3046_v46  ;;  %v3145_v37 = vcombine.low %v3046_v46, %v3046_v46 }
  0xf9   : > { %469 = vst [vmem:[#allocation3 + $0xc] sm:$0xf] %v463_v48  ;;  %v2548_v3 = vpack.i.bf16 %v2922_v63, %v2922_v63 }
  0xfa   : > { %468 = vst [vmem:[#allocation3 + $0x4] sm:$0xff] %v3051_v49 }
 0x100   : > { %v3054_v50 = vld [vmem:[#allocation3 + $0xc] sm:$0xff] }
 0x101   : > { %v3056_v51 = vld [vmem:[#allocation3 + $0x8] sm:$0xff]  ;;  %v3058_v52 = vld [vmem:[#allocation3] sm:$0xff]  ;;  %v819_v54 = vcombine.low %v3054_v50, %v3054_v50  ;;  %v2468_v55 = vpack.i.bf16 %v3051_v49, %v3054_v50  ;;  %v2533_v0 = vpack.i.bf16 %v2922_v63, %v3054_v50  ;;  %v2563_v4 = vpack.i.bf16 %v3054_v50, %v2922_v63 }
 0x102   : > { %v2453_v53 = vpack.i.bf16 %v3058_v52, %v3056_v51  ;;  %v479_v57 = vcombine.low %v3056_v51, %v3056_v51  ;;  %v478_v59 = vcombine.low %v3058_v52, %v3058_v52 }
 0x103   : > { %v2458_v56 = vpack.i.bf16 %v819_v54, %v3051_v49  ;;  %v2518_v2 = vpack.i.bf16 %v3054_v50, %v819_v54 }
 0x104   : > { %2454 = vrot.lane.b32.xlu0 %v2453_v53, %s2936_s11  ;;  %2449 = vrot.lane.b32.xlu1 %v2453_v53, %s2936_s11  ;;  %v2473_v58 = vpack.i.bf16 %v479_v57, %v3058_v52  ;;  %v2478_v60 = vpack.i.bf16 %v3056_v51, %v479_v57  ;;  %v2483_v61 = vpack.i.bf16 %v478_v59, %v478_v59 }
 0x105   : > { %v2493_v62 = vpack.i.bf16 %v478_v59, %v3056_v51 }
 0x108   : > { %2469 = vrot.lane.b32.xlu0 %v2468_v55, %s2936_s11  ;;  %2459 = vrot.lane.b32.xlu1 %v2458_v56, %s2937_s12 }
 0x10c   : > { %2464 = vrot.lane.b32.xlu1 %v2458_v56, %s2936_s11  ;;  %2474 = vrot.lane.b32.xlu0 %v2473_v58, %s2936_s11 }
 0x110   : > { %2479 = vrot.lane.b32.xlu1 %v2478_v60, %s2936_s11  ;;  %2484 = vrot.lane.b32.xlu0 %v2483_v61, %s2936_s11 }
 0x114   : > { %2489 = vrot.lane.b32.xlu1 %v2473_v58, %s2937_s12  ;;  %2494 = vrot.lane.b32.xlu0 %v2493_v62, %s2937_s12 }
 0x118   : > { %2499 = vrot.lane.b32.xlu1 %v2473_v58, %s2936_s11  ;;  %2504 = vrot.lane.b32.xlu0 %v2493_v62, %s2936_s11 }
 0x11c   : > { %2509 = vrot.lane.b32.xlu1 %v2473_v58, %s2936_s11  ;;  %2529 = vrot.lane.b32.xlu0 %v2483_v61, %s2936_s11 }
 0x120   : > { %2514 = vrot.lane.b32.xlu1 %v2478_v60, %s2936_s11  ;;  %2534 = vrot.lane.b32.xlu0 %v2533_v0, %s2937_s12 }
 0x124   : > { %2519 = vrot.lane.b32.xlu1 %v2518_v2, %s2936_s11  ;;  %2539 = vrot.lane.b32.xlu0 %v2468_v55, %s2936_s11 }
 0x128   : > { %2524 = vrot.lane.b32.xlu1 %v2458_v56, %s2936_s11  ;;  %2549 = vrot.lane.b32.xlu0 %v2548_v3, %s2936_s11 }
 0x12c   : > { %2544 = vrot.lane.b32.xlu1 %v2518_v2, %s2936_s11  ;;  %2554 = vrot.lane.b32.xlu0 %v2548_v3, %s2936_s11  ;;  %v3181_v2 = vcombine.high %v3058_v52, %v3058_v52 }
 0x130   : > { %2559 = vrot.lane.b32.xlu1 %v2458_v56, %s2936_s11  ;;  %2564 = vrot.lane.b32.xlu0 %v2563_v4, %s2936_s11 }
 0x176   : > { %v3101_v5 = vpop.permute.xlu0 %2454  ;;  %v3103_v6 = vpop.permute.xlu1 %2449 }
 0x177   : > { %v2452_v30 = vunpack.i.h.bf16 %v3103_v6  ;;  %v2451_v33 = vunpack.i.l.bf16 %v3103_v6 }
 0x17a   : > { %v3105_v7 = vpop.permute.xlu0 %2469  ;;  %v3107_v8 = vpop.permute.xlu1 %2459 }
 0x17b   : > { %v2462_v19 = vunpack.i.h.bf16 %v3107_v8  ;;  %v2461_v20 = vunpack.i.l.bf16 %v3107_v8  ;;  %v2471_v26 = vunpack.i.l.bf16 %v3105_v7  ;;  %v2472_v40 = vunpack.i.h.bf16 %v3105_v7 }
 0x17d   : > { %v829_v29 = vsel %vm592_vm4, %v2461_v20, %v2462_v19 }
 0x17e   : > { %v3109_v9 = vpop.permute.xlu1 %2464  ;;  %v2475_v10 = vpop.permute.xlu0 %2474  ;;  %v836_v48 = vsel %vm496_vm6, %v3145_v37, %v829_v29 }
 0x17f   : > { %v2467_v21 = vunpack.i.h.bf16 %v3109_v9  ;;  %v2466_v22 = vunpack.i.l.bf16 %v3109_v9  ;;  %v2477_v23 = vunpack.i.h.bf16 %v2475_v10  ;;  %v2476_v27 = vunpack.i.l.bf16 %v2475_v10 }
 0x181   : > { %v880_v36 = vsel %vm488_vm5, %v2466_v22, %v2467_v21  ;;  %v881_v42 = vsel %vm488_vm5, %v2467_v21, %v2471_v26  ;;  %v491_v45 = vsel %vm488_vm5, %v2477_v23, %v2451_v33  ;;  %v490_v54 = vsel %vm488_vm5, %v2476_v27, %v2477_v23 }
 0x182   : > { %v3111_v11 = vpop.permute.xlu1 %2479  ;;  %v2485_v12 = vpop.permute.xlu0 %2484  ;;  %v887_v57 = vsel %vm496_vm6, %v3145_v37, %v880_v36  ;;  %v888_v61 = vsel %vm496_vm6, %v3054_v50, %v881_v42  ;;  %v3195_v21 = vcombine.high %v3056_v51, %v3056_v51 }
 0x183   : > { %v2481_v43 = vunpack.i.l.bf16 %v3111_v11  ;;  %v2482_v47 = vunpack.i.h.bf16 %v3111_v11  ;;  %v2487_v58 = vunpack.i.h.bf16 %v2485_v12  ;;  %v2486_v59 = vunpack.i.l.bf16 %v2485_v12 }
 0x184   : > { %v2573_v11 = vpack.i.bf16 %v888_v61, %v887_v57  ;;  %v498_v12 = vsel %vm496_vm6, %v3181_v2, %v490_v54 }
 0x185   : > { %v542_v62 = vsel %vm488_vm5, %v2452_v30, %v2481_v43  ;;  %v543_v3 = vsel %vm488_vm5, %v2481_v43, %v2482_v47  ;;  %v541_v23 = vsel %vm488_vm5, %v2487_v58, %v2452_v30  ;;  %v489_v29 = vsel %vm488_vm5, %v2486_v59, %v2476_v27 }
 0x186   : > { %v3113_v13 = vpop.permute.xlu1 %2489  ;;  %v3115_v14 = vpop.permute.xlu0 %2494  ;;  %v549_v42 = vsel %vm496_vm6, %v3181_v2, %v542_v62  ;;  %v548_v58 = vsel %vm496_vm6, %v3058_v52, %v541_v23  ;;  %v497_v62 = vsel %vm496_vm6, %v3058_v52, %v489_v29 }
 0x187   : > { %v2492_v43 = vunpack.i.h.bf16 %v3113_v13 }
 0x18a   : > { %v3117_v15 = vpop.permute.xlu1 %2499  ;;  %v3119_v16 = vpop.permute.xlu0 %2504 }
 0x18b   : > { %v2501_v54 = vunpack.i.l.bf16 %v3117_v15  ;;  %v2506_v30 = vunpack.i.l.bf16 %v3119_v16 }
 0x18e   : > { %v3121_v17 = vpop.permute.xlu1 %2509  ;;  %v3123_v18 = vpop.permute.xlu0 %2529 }
 0x192   : > { %v3129_v24 = vpop.permute.xlu1 %2514  ;;  %v3131_v25 = vpop.permute.xlu0 %2534 }
 0x193   : > { %v2536_v28 = vunpack.i.l.bf16 %v3131_v25  ;;  %v2517_v29 = vunpack.i.h.bf16 %v3129_v24 }
 0x195   : > { %v830_v44 = vsel %vm592_vm4, %v2462_v19, %v2536_v28  ;;  %v499_v19 = vsel %vm496_vm6, %v3056_v51, %v491_v45  ;;  %v550_v45 = vsel %vm496_vm6, %v3056_v51, %v543_v3  ;;  %v500_v3 = vsel %vm496_vm6, %v3195_v21, %v2451_v33 }
 0x196   : > { %v3159_v46 = vpop.permute.xlu1 %2519  ;;  %v837_v53 = vsel %vm496_vm6, %v3054_v50, %v830_v44  ;;  %v2491_v44 = vunpack.i.l.bf16 %v3113_v13  ;;  %v2583_v27 = vpack.i.bf16 %v499_v19, %v498_v12  ;;  %v2497_v13 = vunpack.i.h.bf16 %v3115_v14 }
 0x197   : > { %v2522_v55 = vunpack.i.h.bf16 %v3159_v46  ;;  %v2521_v56 = vunpack.i.l.bf16 %v3159_v46  ;;  %v2568_v60 = vpack.i.bf16 %v837_v53, %v836_v48  ;;  %v2496_v48 = vunpack.i.l.bf16 %v3115_v14 }
 0x198   : > { %v2502_v53 = vunpack.i.h.bf16 %v3117_v15  ;;  %v2588_v57 = vpack.i.bf16 %v550_v45, %v549_v42  ;;  %v551_v15 = vsel %vm496_vm6, %v3195_v21, %v2482_v47  ;;  %v594_v59 = vsel %vm592_vm4, %v2491_v44, %v2492_v43 }
 0x199   : > { %v931_v63 = vsel %vm488_vm5, %v2472_v40, %v2521_v56  ;;  %v932_v0 = vsel %vm488_vm5, %v2521_v56, %v2522_v55  ;;  %2569 = vrot.lane.b32.xlu1 %v2568_v60, %s2938_s13  ;;  %v2941_v56 = vmov 0.0|0.0   ;;  %v595_v60 = vsel %vm592_vm4, %v2492_v43, %v2496_v48  ;;  %v3250_v43 = vpop.permute.xlu0 %2539 }
 0x19a   : > { %v938_v4 = vsel %vm496_vm6, %v3145_v37, %v931_v63  ;;  %v939_v10 = vsel %vm496_vm6, %v3054_v50, %v932_v0  ;;  %2354 = vmatprep.subr.bf16.mxu1 %v2941_v56  ;;  %v3219_v61 = vpop.permute.xlu1 %2524  ;;  %v645_v63 = vsel %vm488_vm5, %v2501_v54, %v2502_v53  ;;  %v2507_v14 = vunpack.i.h.bf16 %v3119_v16 }
 0x19b   : > { %v2578_v36 = vpack.i.bf16 %v939_v10, %v938_v4  ;;  %v646_v0 = vsel %vm488_vm5, %v2502_v53, %v2506_v30  ;;  %v2598_v47 = vpack.i.bf16 %v551_v15, %v548_v58  ;;  %v593_v4 = vsel %vm592_vm4, %v2497_v13, %v2491_v44 }
 0x19c   : > { %v2593_v10 = vpack.i.bf16 %v500_v3, %v497_v62  ;;  %v601_v16 = vsel %vm496_vm6, %v3181_v2, %v594_v59  ;;  %v2512_v12 = vunpack.i.h.bf16 %v3121_v17  ;;  %v2511_v19 = vunpack.i.l.bf16 %v3121_v17 }
 0x19d   : > { %2579 = vrot.lane.b32.xlu0 %v2578_v36, %s2939_s14  ;;  %2574 = vrot.lane.b32.xlu1 %v2573_v11, %s2940_s15  ;;  %v602_v11 = vsel %vm496_vm6, %v3056_v51, %v595_v60  ;;  %v652_v23 = vsel %vm496_vm6, %v3181_v2, %v645_v63  ;;  %v653_v6 = vsel %vm496_vm6, %v3056_v51, %v646_v0  ;;  %v2516_v36 = vunpack.i.l.bf16 %v3129_v24  ;;  %v2550_v0 = vpop.permute.xlu0 %2549 }
 0x19e   : > { %v644_v33 = vsel %vm488_vm5, %v2507_v14, %v2501_v54  ;;  %v2457_v42 = vunpack.i.h.bf16 %v3101_v5  ;;  %v2456_v17 = vunpack.i.l.bf16 %v3101_v5  ;;  %v3252_v44 = vpop.permute.xlu1 %2544  ;;  %v600_v45 = vsel %vm496_vm6, %v3058_v52, %v593_v4 }
 0x19f   : > { %v2531_v53 = vunpack.i.l.bf16 %v3123_v18  ;;  %v2608_v54 = vpack.i.bf16 %v653_v6, %v652_v23  ;;  %v603_v24 = vsel %vm496_vm6, %v3195_v21, %v2496_v48  ;;  %v651_v5 = vsel %vm496_vm6, %v3058_v52, %v644_v33 }
 0x1a0   : > { %v697_v13 = vsel %vm488_vm5, %v2512_v12, %v2456_v17  ;;  %v654_v58 = vsel %vm496_vm6, %v3195_v21, %v2506_v30  ;;  %v747_v15 = vsel %vm488_vm5, %v2457_v42, %v2516_v36  ;;  %v748_v59 = vsel %vm488_vm5, %v2516_v36, %v2517_v29 }
 0x1a1   : > { %2589 = vrot.lane.b32.xlu0 %v2588_v57, %s2942_s16  ;;  %2584 = vrot.lane.b32.xlu1 %v2583_v27, %s2943_s17  ;;  %v2603_v27 = vpack.i.bf16 %v602_v11, %v601_v16  ;;  %v696_v57 = vsel %vm488_vm5, %v2511_v19, %v2512_v12  ;;  %v2547_v60 = vunpack.i.h.bf16 %v3252_v44  ;;  %v2546_v62 = vunpack.i.l.bf16 %v3252_v44 }
 0x1a2   : > { %v695_v48 = vsel %vm488_vm5, %v2531_v53, %v2511_v19  ;;  %v2542_v63 = vunpack.i.h.bf16 %v3250_v43  ;;  %v2618_v14 = vpack.i.bf16 %v654_v58, %v651_v5  ;;  %v2613_v30 = vpack.i.bf16 %v603_v24, %v600_v45 }
 0x1a3   : > { %v755_v3 = vsel %vm496_vm6, %v3056_v51, %v748_v59  ;;  %v703_v4 = vsel %vm496_vm6, %v3181_v2, %v696_v57  ;;  %v2527_v16 = vunpack.i.h.bf16 %v3219_v61  ;;  %v2526_v11 = vunpack.i.l.bf16 %v3219_v61 }
 0x1a4   : > { %v1033_v12 = vsel %vm488_vm5, %v2542_v63, %v2546_v62  ;;  %v1034_v19 = vsel %vm488_vm5, %v2546_v62, %v2547_v60  ;;  %v702_v36 = vsel %vm496_vm6, %v3058_v52, %v695_v48  ;;  %v2537_v45 = vunpack.i.h.bf16 %v3131_v25 }
 0x1a5   : > { %2599 = vrot.lane.b32.xlu0 %v2598_v47, %s2942_s16  ;;  %2594 = vrot.lane.b32.xlu1 %v2593_v10, %s2943_s17  ;;  %v754_v47 = vsel %vm496_vm6, %v3181_v2, %v747_v15  ;;  %v704_v10 = vsel %vm496_vm6, %v3056_v51, %v697_v13  ;;  %v2532_v2 = vunpack.i.h.bf16 %v3123_v18  ;;  %v2541_v51 = vunpack.i.l.bf16 %v3250_v43 }
 0x1a6   : > { %v2628_v23 = vpack.i.bf16 %v755_v3, %v754_v47  ;;  %v2623_v6 = vpack.i.bf16 %v704_v10, %v703_v4  ;;  %v1040_v61 = vsel %vm496_vm6, %v3145_v37, %v1033_v12  ;;  %v1041_v33 = vsel %vm496_vm6, %v3054_v50, %v1034_v19  ;;  %v3375_v12 = vpop.permute.xlu1 %2559 }
 0x1a7   : > { %v982_v53 = vsel %vm488_vm5, %v2526_v11, %v2527_v16  ;;  %v2551_v18 = vunpack.i.l.bf16 %v2550_v0  ;;  %v705_v24 = vsel %vm496_vm6, %v3195_v21, %v2456_v17  ;;  %v746_v13 = vsel %vm488_vm5, %v2532_v2, %v2457_v42 }
 0x1a8   : > { %v2643_v57 = vpack.i.bf16 %v1041_v33, %v1040_v61  ;;  %v2633_v5 = vpack.i.bf16 %v705_v24, %v702_v36  ;;  %v756_v58 = vsel %vm496_vm6, %v3195_v21, %v2517_v29  ;;  %v989_v15 = vsel %vm496_vm6, %v3145_v37, %v982_v53 }
 0x1a9   : > { %2609 = vrot.lane.b32.xlu0 %v2608_v54, %s2944_s18  ;;  %2604 = vrot.lane.b32.xlu1 %v2603_v27, %s2945_s19  ;;  %v983_v54 = vsel %vm488_vm5, %v2527_v16, %v2541_v51  ;;  %v2555_v27 = vpop.permute.xlu0 %2554  ;;  %v828_v62 = vsel %vm592_vm4, %v2537_v45, %v2461_v20  ;;  %v2552_v48 = vunpack.i.h.bf16 %v2550_v0  ;;  %v879_v42 = vsel %vm488_vm5, %v2551_v18, %v2466_v22 }
 0x1aa   : > { %v990_v59 = vsel %vm496_vm6, %v3054_v50, %v983_v54  ;;  %v2556_v17 = vunpack.i.l.bf16 %v2555_v27  ;;  %v753_v21 = vsel %vm496_vm6, %v3058_v52, %v746_v13  ;;  %v815_v29 = vcombine.high %v3054_v50, %v3054_v50 }
 0x1ab   : > { %v2648_v8 = vpack.i.bf16 %v756_v58, %v753_v21  ;;  %v835_v20 = vsel %vm496_vm6, %v3051_v49, %v828_v62  ;;  %v886_v22 = vsel %vm496_vm6, %v3051_v49, %v879_v42  ;;  %v2557_v52 = vunpack.i.h.bf16 %v2555_v27 }
 0x1ac   : > { %v838_v9 = vsel %vm496_vm6, %v815_v29, %v2536_v28  ;;  %v981_v0 = vsel %vm488_vm5, %v2556_v17, %v2526_v11  ;;  %v889_v25 = vsel %vm496_vm6, %v815_v29, %v2471_v26  ;;  %v940_v7 = vsel %vm496_vm6, %v815_v29, %v2522_v55 }
 0x1ad   : > { %2619 = vrot.lane.b32.xlu0 %v2618_v14, %s2944_s18  ;;  %2614 = vrot.lane.b32.xlu1 %v2613_v30, %s2945_s19  ;;  %v2638_v14 = vpack.i.bf16 %v990_v59, %v989_v15  ;;  %v930_v30 = vsel %vm488_vm5, %v2552_v48, %v2472_v40  ;;  %v2653_v28 = vpack.i.bf16 %v838_v9, %v835_v20  ;;  %v1074_v55 = vsel %vm496_vm6, %v3145_v37, 0.0  ;;  %v3377_v19 = vpop.permute.xlu0 %2564 }
 0x1ae   : > { %v2658_v47 = vpack.i.bf16 %v889_v25, %v886_v22  ;;  %v937_v3 = vsel %vm496_vm6, %v3051_v49, %v930_v30  ;;  %v988_v40 = vsel %vm496_vm6, %v3051_v49, %v981_v0  ;;  %v1032_v4 = vsel %vm488_vm5, %v2557_v52, %v2542_v63 }
 0x1af   : > { %v991_v26 = vsel %vm496_vm6, %v815_v29, %v2541_v51  ;;  %v2663_v10 = vpack.i.bf16 %v940_v7, %v937_v3  ;;  %v1039_v11 = vsel %vm496_vm6, %v3051_v49, %v1032_v4  ;;  %v1042_v43 = vsel %vm496_vm6, %v815_v29, %v2547_v60 }
 0x1b0   : > { %v2668_v16 = vpack.i.bf16 %v991_v26, %v988_v40  ;;  %v2673_v46 = vpack.i.bf16 %v1042_v43, %v1039_v11  ;;  %v1075_v44 = vsel %vm496_vm6, %v3054_v50, 0.0  ;;  %v1073_v60 = vsel %vm496_vm6, %v3051_v49, 0.0 }
 0x1b1   : > { %2629 = vrot.lane.b32.xlu0 %v2628_v23, %s2946_s20  ;;  %2624 = vrot.lane.b32.xlu1 %v2623_v6, %s2947_s23  ;;  %v1076_v63 = vsel %vm496_vm6, %v815_v29, 0.0  ;;  %v2561_v4 = vunpack.i.l.bf16 %v3375_v12  ;;  %v2566_v7 = vunpack.i.l.bf16 %v3377_v19 }
 0x1b5   : > { %2644 = vrot.lane.b32.xlu0 %v2643_v57, %s2948_s24  ;;  %2634 = vrot.lane.b32.xlu1 %v2633_v5, %s2947_s23 }
 0x1b9   : > { %2649 = vrot.lane.b32.xlu0 %v2648_v8, %s2946_s20  ;;  %2639 = vrot.lane.b32.xlu1 %v2638_v14, %s2949_s25 }
 0x1bd   : > { %2654 = vrot.lane.b32.xlu0 %v2653_v28, %s2938_s13  ;;  %2659 = vrot.lane.b32.xlu1 %v2658_v47, %s2940_s15 }
 0x1c1   : > { %2664 = vrot.lane.b32.xlu0 %v2663_v10, %s2939_s14  ;;  %2669 = vrot.lane.b32.xlu1 %v2668_v16, %s2949_s25 }
 0x1c5   : > { %2674 = vrot.lane.b32.xlu0 %v2673_v46, %s2948_s24  ;;  %1083 = vrot.lane.b32.xlu1 %v1074_v55, %s2951_s26 }
 0x1c9   : > { %1085 = vrot.lane.b32.xlu0 %v1075_v44, %s2951_s26  ;;  %1081 = vrot.lane.b32.xlu1 %v1073_v60, %s2951_s26 }
 0x1cd   : > { %1087 = vrot.lane.b32.xlu0 %v1076_v63, %s2951_s26 }
 0x20b   : > { %v3379_v2 = vpop.permute.xlu1 %2569 }
 0x20f   : > { %v3381_v51 = vpop.permute.xlu0 %2579  ;;  %v3383_v50 = vpop.permute.xlu1 %2574 }
 0x213   : > { %v2590_v23 = vpop.permute.xlu0 %2589  ;;  %v2585_v6 = vpop.permute.xlu1 %2584 }
 0x214   : > { %v2592_v61 = vunpack.i.h.bf16 %v2590_v23  ;;  %v2591_v33 = vunpack.i.l.bf16 %v2590_v23  ;;  %v2587_v36 = vunpack.i.h.bf16 %v2585_v6  ;;  %v2586_v45 = vunpack.i.l.bf16 %v2585_v6 }
 0x216   : > { %v515_v53 = vsel %vm513_vm9, %v2586_v45, %v2587_v36  ;;  %v566_v54 = vsel %vm564_vm8, %v2591_v33, %v2592_v61 }
 0x217   : > { %v2600_v18 = vpop.permute.xlu0 %2599  ;;  %v2595_v27 = vpop.permute.xlu1 %2594  ;;  %v2330_v24 = vpack.c.bf16 %v566_v54, %v515_v53 }
 0x218   : > { %v2602_v13 = vunpack.i.h.bf16 %v2600_v18  ;;  %v2601_v57 = vunpack.i.l.bf16 %v2600_v18  ;;  %v2597_v5 = vunpack.i.h.bf16 %v2595_v27  ;;  %v2596_v58 = vunpack.i.l.bf16 %v2595_v27 }
 0x219   : > { %2331 = vmatprep.subr.bf16.mxu0 %v2330_v24  ;;  %v798_v27 = vsel %vm488_vm5, %v2566_v7, %v2561_v4  ;;  %v2572_v24 = vunpack.i.h.bf16 %v3379_v2 }
 0x21a   : > { %v567_v15 = vsel %vm564_vm8, %v2592_v61, %v2602_v13  ;;  %v565_v59 = vsel %vm564_vm8, %v2601_v57, %v2591_v33  ;;  %v514_v62 = vsel %vm513_vm9, %v2596_v58, %v2586_v45  ;;  %v516_v48 = vsel %vm513_vm9, %v2587_v36, %v2597_v5 }
 0x21b   : > { %v2332_v42 = vpack.c.bf16 %v565_v59, %v514_v62  ;;  %v2355_v17 = vpack.c.bf16 %v567_v15, %v516_v48  ;;  %v2610_v21 = vpop.permute.xlu0 %2609  ;;  %v2605_v29 = vpop.permute.xlu1 %2604  ;;  %v2562_v36 = vunpack.i.h.bf16 %v3375_v12  ;;  %v2567_v45 = vunpack.i.h.bf16 %v3377_v19 }
 0x21c   : > { %v2612_v8 = vunpack.i.h.bf16 %v2610_v21  ;;  %v2611_v14 = vunpack.i.l.bf16 %v2610_v21  ;;  %v2607_v20 = vunpack.i.h.bf16 %v2605_v29  ;;  %v2606_v9 = vunpack.i.l.bf16 %v2605_v29 }
 0x21d   : > { %2333 = vmatpush1.bf16.msra.mxu0 %v2332_v42  ;;  %2356 = vmatpush3.bf16.msra.mxu1 %v2355_v17  ;;  %v2571_v13 = vunpack.i.l.bf16 %v3379_v2  ;;  %v799_v58 = vsel %vm488_vm5, %v2561_v4, %v2562_v36  ;;  %v800_v12 = vsel %vm488_vm5, %v2562_v36, %v2567_v45  ;;  %v804_v59 = vsel %vm496_vm6, %v3051_v49, %v798_v27 }
 0x21e   : > { %v618_v22 = vsel %vm616_vm11, %v2606_v9, %v2607_v20  ;;  %v669_v30 = vsel %vm667_vm10, %v2611_v14, %v2612_v8  ;;  %2357 = vmatprep.subr.bf16.mxu1 %v2941_v56  ;;  %v2577_v62 = vunpack.i.h.bf16 %v3383_v50  ;;  %v2576_v48 = vunpack.i.l.bf16 %v3383_v50 }
 0x21f   : > { %v2620_v52 = vpop.permute.xlu0 %2619  ;;  %v2615_v0 = vpop.permute.xlu1 %2614  ;;  %v2334_v25 = vpack.c.bf16 %v669_v30, %v618_v22  ;;  %v2582_v17 = vunpack.i.h.bf16 %v3381_v51  ;;  %v2581_v21 = vunpack.i.l.bf16 %v3381_v51  ;;  %v853_v29 = vsel %vm851_vm14, %v2571_v13, %v2572_v24 }
 0x220   : > { %v2622_v28 = vunpack.i.h.bf16 %v2620_v52  ;;  %v2621_v47 = vunpack.i.l.bf16 %v2620_v52  ;;  %v2617_v3 = vunpack.i.h.bf16 %v2615_v0  ;;  %v2616_v40 = vunpack.i.l.bf16 %v2615_v0 }
 0x221   : > { %2335 = vmatprep.subr.bf16.mxu0 %v2334_v25  ;;  %v805_v51 = vsel %vm496_vm6, %v3145_v37, %v799_v58 }
 0x222   : > { %v668_v26 = vsel %vm667_vm10, %v2621_v47, %v2611_v14  ;;  %v670_v10 = vsel %vm667_vm10, %v2612_v8, %v2622_v28  ;;  %v617_v16 = vsel %vm616_vm11, %v2616_v40, %v2606_v9  ;;  %v619_v11 = vsel %vm616_vm11, %v2607_v20, %v2617_v3  ;;  %v780_v9 = vld [vmem:[#allocation3 + $0xc] sm:$0xf] }
 0x223   : > { %v2336_v43 = vpack.c.bf16 %v668_v26, %v617_v16  ;;  %v2358_v46 = vpack.c.bf16 %v670_v10, %v619_v11  ;;  %v2630_v55 = vpop.permute.xlu0 %2629  ;;  %v2625_v44 = vpop.permute.xlu1 %2624  ;;  %v806_v30 = vsel %vm496_vm6, %v780_v9, %v800_v12  ;;  %v2342_v47 = vpack.c.bf16 %v853_v29, %v805_v51 }
 0x224   : > { %v2632_v60 = vunpack.i.h.bf16 %v2630_v55  ;;  %v2631_v63 = vunpack.i.l.bf16 %v2630_v55  ;;  %v2627_v23 = vunpack.i.h.bf16 %v2625_v44  ;;  %v2626_v6 = vunpack.i.l.bf16 %v2625_v44 }
 0x225   : > { %2337 = vmatpush1.bf16.msra.mxu0 %v2336_v43  ;;  %2359 = vmatpush3.bf16.msra.mxu1 %v2358_v46  ;;  %v904_v3 = vsel %vm902_vm15, %v2576_v48, %v2577_v62  ;;  %v955_v26 = vsel %vm953_vm0, %v2581_v21, %v2582_v17  ;;  %v1142_v9 = vrot.slane %v3022_v31, 4 }
 0x226   : > { %v720_v61 = vsel %vm718_vm12, %v2626_v6, %v2627_v23  ;;  %v771_v33 = vsel %vm769_vm13, %v2631_v63, %v2632_v60  ;;  %2360 = vmatprep.subr.bf16.mxu1 %v2941_v56 }
 0x227   : > { %v3405_v53 = vpop.permute.xlu0 %2644  ;;  %v2635_v54 = vpop.permute.xlu1 %2634  ;;  %v2338_v18 = vpack.c.bf16 %v771_v33, %v720_v61 }
 0x228   : > { %v2637_v57 = vunpack.i.h.bf16 %v2635_v54  ;;  %v2636_v5 = vunpack.i.l.bf16 %v2635_v54  ;;  %v2647_v37 = vunpack.i.h.bf16 %v3405_v53  ;;  %v2646_v43 = vunpack.i.l.bf16 %v3405_v53 }
 0x229   : > { %2339 = vmatprep.subr.bf16.mxu0 %v2338_v18 }
 0x22a   : > { %v719_v8 = vsel %vm718_vm12, %v2636_v5, %v2626_v6  ;;  %v721_v14 = vsel %vm718_vm12, %v2627_v23, %v2637_v57  ;;  %v2346_v6 = vpack.c.bf16 %v955_v26, %v904_v3  ;;  %v1057_v5 = vsel %vm3897_vm2, %v2646_v43, %v2647_v37 }
 0x22b   : > { %v2650_v15 = vpop.permute.xlu0 %2649  ;;  %v3412_v19 = vpop.permute.xlu1 %2639 }
 0x22c   : > { %v2652_v2 = vunpack.i.h.bf16 %v2650_v15  ;;  %v2651_v42 = vunpack.i.l.bf16 %v2650_v15  ;;  %v2642_v40 = vunpack.i.h.bf16 %v3412_v19  ;;  %v2641_v4 = vunpack.i.l.bf16 %v3412_v19 }
 0x22e   : > { %v770_v49 = vsel %vm769_vm13, %v2651_v42, %v2631_v63  ;;  %v772_v20 = vsel %vm769_vm13, %v2632_v60, %v2652_v2  ;;  %v1006_v36 = vsel %vm3900_vm1, %v2641_v4, %v2642_v40 }
 0x22f   : > { %v2340_v22 = vpack.c.bf16 %v770_v49, %v719_v8  ;;  %v2361_v50 = vpack.c.bf16 %v772_v20, %v721_v14  ;;  %v2655_v52 = vpop.permute.xlu0 %2654  ;;  %v2660_v0 = vpop.permute.xlu1 %2659  ;;  %v2350_v15 = vpack.c.bf16 %v1057_v5, %v1006_v36  ;;  %v1099_v14 = vld [vmem:[%s3895_s5] sm:$0xf] }
 0x230   : > { %v2657_v25 = vunpack.i.h.bf16 %v2655_v52  ;;  %v2656_v28 = vunpack.i.l.bf16 %v2655_v52  ;;  %v2662_v7 = vunpack.i.h.bf16 %v2660_v0  ;;  %v2661_v11 = vunpack.i.l.bf16 %v2660_v0 }
 0x231   : > { %2341 = vmatpush1.bf16.msra.mxu0 %v2340_v22  ;;  %2362 = vmatpush3.bf16.msra.mxu1 %v2361_v50  ;;  %v1144_v22 = vrot.slane %v3034_v39, 4  ;;  %v1143_v52 = vrot.slane %v3028_v35, 4 }
 0x232   : > { %v854_v10 = vsel %vm851_vm14, %v2572_v24, %v2657_v25  ;;  %v852_v16 = vsel %vm851_vm14, %v2656_v28, %v2571_v13  ;;  %2343 = vmatprep.subr.bf16.mxu0 %v2342_v47  ;;  %2363 = vmatprep.subr.bf16.mxu1 %v2941_v56  ;;  %v905_v61 = vsel %vm902_vm15, %v2577_v62, %v2662_v7 }
 0x233   : > { %v2364_v46 = vpack.c.bf16 %v854_v10, %v806_v30  ;;  %v2344_v55 = vpack.c.bf16 %v852_v16, %v804_v59  ;;  %v2665_v44 = vpop.permute.xlu0 %2664  ;;  %v2670_v60 = vpop.permute.xlu1 %2669  ;;  %v903_v45 = vsel %vm902_vm15, %v2661_v11, %v2576_v48 }
 0x234   : > { %v2667_v63 = vunpack.i.h.bf16 %v2665_v44  ;;  %v2666_v23 = vunpack.i.l.bf16 %v2665_v44  ;;  %v2671_v33 = vunpack.i.l.bf16 %v2670_v60  ;;  %v2672_v18 = vunpack.i.h.bf16 %v2670_v60 }
 0x235   : > { %2345 = vmatpush1.bf16.msra.mxu0 %v2344_v55  ;;  %2365 = vmatpush3.bf16.msra.mxu1 %v2364_v46 }
 0x236   : > { %v956_v53 = vsel %vm953_vm0, %v2582_v17, %v2667_v63  ;;  %v954_v54 = vsel %vm953_vm0, %v2666_v23, %v2581_v21  ;;  %2347 = vmatprep.subr.bf16.mxu0 %v2346_v6  ;;  %2366 = vmatprep.subr.bf16.mxu1 %v2941_v56  ;;  %v1005_v19 = vsel %vm3900_vm1, %v2671_v33, %v2641_v4 }
 0x237   : > { %v2348_v27 = vpack.c.bf16 %v954_v54, %v903_v45  ;;  %v2367_v24 = vpack.c.bf16 %v956_v53, %v905_v61  ;;  %v2675_v13 = vpop.permute.xlu0 %2674  ;;  %v1084_v57 = vpop.permute.xlu1 %1083  ;;  %v1007_v59 = vsel %vm3900_vm1, %v2642_v40, %v2672_v18 }
 0x238   : > { %v2677_v58 = vunpack.i.h.bf16 %v2675_v13  ;;  %v2676_v12 = vunpack.i.l.bf16 %v2675_v13 }
 0x239   : > { %2349 = vmatpush1.bf16.msra.mxu0 %v2348_v27  ;;  %2368 = vmatpush3.bf16.msra.mxu1 %v2367_v24 }
 0x23a   : > { %v1056_v62 = vsel %vm3897_vm2, %v2676_v12, %v2646_v43  ;;  %v1058_v48 = vsel %vm3897_vm2, %v2647_v37, %v2677_v58  ;;  %2351 = vmatprep.subr.bf16.mxu0 %v2350_v15  ;;  %2369 = vmatprep.subr.bf16.mxu1 %v2941_v56  ;;  %vm3898_vm2 = vcmask 850944  }
 0x23b   : > { %v2352_v2 = vpack.c.bf16 %v1056_v62, %v1005_v19  ;;  %v2370_v42 = vpack.c.bf16 %v1058_v48, %v1007_v59  ;;  %v1086_v17 = vpop.permute.xlu0 %1085  ;;  %v1082_v29 = vpop.permute.xlu1 %1081 }
 0x23c   : > { %v1091_v21 = vsel %vm3899_vm3, %v1084_v57, %v1086_v17  ;;  %v1090_v49 = vsel %vm3899_vm3, %v1082_v29, %v1084_v57 }
 0x23d   : > { %2353 = vmatpush1.bf16.msra.mxu0 %v2352_v2  ;;  %2371 = vmatpush3.bf16.msra.mxu1 %v2370_v42 }
 0x23e   : > { %1176 = vmatprep.subr.mxu0 %v1091_v21  ;;  %2280 = vmatprep.subr.mxu1 %v2934_v1 }
 0x23f   : > { %v1088_v8 = vpop.permute.xlu0 %1087 }
 0x240   : > { %v1092_v20 = vsel %vm3899_vm3, %v1086_v17, %v1088_v8 }
 0x241   : > { %1177 = vmatpush1.msra.mxu0 %v1090_v49  ;;  %2281 = vmatpush3.msra.mxu1 %v1092_v20 }
 0x242   : > { %2204 = vmatmul.mubr.msk.f32.vlgmr.msra.gmra.mrb[4].mxu0 %vm3898_vm2, %v1099_v14  ;;  %2283 = vmatmul.mubr.msk.f32.vlgmr.msra.gmra.mrb[2].mxu1 %vm3898_vm2, %v1099_v14 }
 0x243   : > { %2396 = vmatprep.subr.bf16.mxu1 %v2941_v56  ;;  %2033 = vmatprep.mubr.f32.mxu0 %v2934_v1 }
 0x244   : > { %2311 = vmatprep.mubr.msk.f32.mxu1 %vm2950_vm7, %v2934_v1 }
 0x315   : > { %v1218_v50 = vpop.f32.mrb[4].mxu0  ;;  %v1289_v30 = vpop.f32.mrb[2].mxu1 }
 0x316   : > { %v1219_v0 = vadd.f32 %v1218_v50, %v1142_v9  ;;  %v1290_v51 = vadd.f32 %v1289_v30, %v1144_v22  ;;  %v1220_v25 = vpop.f32.mrb[5].mxu0  ;;  %v2284_v28 = vpop.f32.mrb[3].mxu1 }
 0x317   : > { %v1221_v47 = vadd.f32 %v1220_v25, %v1143_v52 }
 0x318   : > { %vm1293_vm2 = vcmp.gt.f32.partialorder %v1219_v0, 0.0  ;;  %v1296_v3 = vmul.f32 0.2, %v1219_v0  ;;  %vm1295_vm3 = vcmp.gt.f32.partialorder %v1290_v51, 0.0  ;;  %v1298_v40 = vmul.f32 0.2, %v1290_v51 }
 0x319   : > { %vm1294_vm1 = vcmp.gt.f32.partialorder %v1221_v47, 0.0  ;;  %v1297_v4 = vmul.f32 0.2, %v1221_v47 }
 0x31a   : > { %v1299_v7 = vsel %vm1293_vm2, %v1219_v0, %v1296_v3  ;;  %v1301_v26 = vsel %vm1295_vm3, %v1290_v51, %v1298_v40  ;;  %vm2145_vm3 = vcmask 0  }
 0x31b   : > { %v1302_v31 = vmul.f32 %v1299_v7, %v3026_v34  ;;  %v1304_v39 = vmul.f32 %v1301_v26, %v3038_v41  ;;  %v1300_v10 = vsel %vm1294_vm1, %v1221_v47, %v1297_v4 }
 0x31c   : > { %v3468_v35 = vmul.f32 %v1300_v10, %v3032_v38 }
 0x31d   : > { %1310 = vst [vmem:[#allocation3 + $0xc] sm:$0xf] %v1304_v39  ;;  %v2924_v45 = vcombine.low %v1302_v31, %v1302_v31 }
 0x31e   : > { %v3471_v16 = vcombine.low %v1302_v31, %v3468_v35  ;;  %v3559_v52 = vcombine.low %v3468_v35, %v3468_v35 }
 0x31f   : > { %v2778_v18 = vpack.i.bf16 %v2924_v45, %v2924_v45 }
 0x320   : > { %1309 = vst [vmem:[#allocation3 + $0x4] sm:$0xff] %v3471_v16 }
 0x324   : > { %v3474_v11 = vld [vmem:[#allocation3 + $0xc] sm:$0xff] }
 0x325   : > { %v1651_v37 = vcombine.low %v3474_v11, %v3474_v11  ;;  %v2698_v23 = vpack.i.bf16 %v3471_v16, %v3474_v11  ;;  %v2763_v53 = vpack.i.bf16 %v2924_v45, %v3474_v11  ;;  %v2793_v27 = vpack.i.bf16 %v3474_v11, %v2924_v45 }
 0x327   : > { %v2688_v43 = vpack.i.bf16 %v1651_v37, %v3471_v16  ;;  %v3479_v46 = vld [vmem:[#allocation3 + $0x8] sm:$0xff]  ;;  %v3481_v55 = vld [vmem:[#allocation3] sm:$0xff]  ;;  %v2748_v54 = vpack.i.bf16 %v3474_v11, %v1651_v37 }
 0x328   : > { %v2678_v44 = vpack.i.bf16 %v3481_v55, %v3479_v46  ;;  %v1320_v60 = vcombine.low %v3479_v46, %v3479_v46  ;;  %v1319_v6 = vcombine.low %v3481_v55, %v3481_v55  ;;  %v3566_v28 = vcombine.high %v3481_v55, %v3481_v55 }
 0x329   : > { %2689 = vrot.lane.b32.xlu1 %v2688_v43, %s2937_s12 }
 0x32a   : > { %2679 = vrot.lane.b32.xlu0 %v2678_v44, %s2936_s11  ;;  %v2703_v63 = vpack.i.bf16 %v1320_v60, %v3481_v55  ;;  %v2708_v61 = vpack.i.bf16 %v3479_v46, %v1320_v60  ;;  %v2713_v33 = vpack.i.bf16 %v1319_v6, %v1319_v6  ;;  %v2723_v36 = vpack.i.bf16 %v1319_v6, %v3479_v46 }
 0x32d   : > { %2694 = vrot.lane.b32.xlu1 %v2688_v43, %s2936_s11 }
 0x32e   : > { %2684 = vrot.lane.b32.xlu0 %v2678_v44, %s2936_s11 }
 0x331   : > { %2704 = vrot.lane.b32.xlu1 %v2703_v63, %s2936_s11 }
 0x332   : > { %2699 = vrot.lane.b32.xlu0 %v2698_v23, %s2936_s11 }
 0x335   : > { %2709 = vrot.lane.b32.xlu1 %v2708_v61, %s2936_s11 }
 0x336   : > { %2714 = vrot.lane.b32.xlu0 %v2713_v33, %s2936_s11 }
 0x339   : > { %2719 = vrot.lane.b32.xlu1 %v2703_v63, %s2937_s12 }
 0x33a   : > { %2724 = vrot.lane.b32.xlu0 %v2723_v36, %s2937_s12 }
 0x33d   : > { %2729 = vrot.lane.b32.xlu1 %v2703_v63, %s2936_s11 }
 0x33e   : > { %2734 = vrot.lane.b32.xlu0 %v2723_v36, %s2936_s11 }
 0x341   : > { %2739 = vrot.lane.b32.xlu1 %v2703_v63, %s2936_s11 }
 0x342   : > { %2759 = vrot.lane.b32.xlu0 %v2713_v33, %s2936_s11 }
 0x345   : > { %2744 = vrot.lane.b32.xlu1 %v2708_v61, %s2936_s11 }
 0x346   : > { %2764 = vrot.lane.b32.xlu0 %v2763_v53, %s2937_s12 }
 0x349   : > { %2749 = vrot.lane.b32.xlu1 %v2748_v54, %s2936_s11 }
 0x34a   : > { %2769 = vrot.lane.b32.xlu0 %v2698_v23, %s2936_s11 }
 0x34d   : > { %2754 = vrot.lane.b32.xlu1 %v2688_v43, %s2936_s11 }
 0x34e   : > { %2779 = vrot.lane.b32.xlu0 %v2778_v18, %s2936_s11 }
 0x351   : > { %2774 = vrot.lane.b32.xlu1 %v2748_v54, %s2936_s11 }
 0x352   : > { %2784 = vrot.lane.b32.xlu0 %v2778_v18, %s2936_s11 }
 0x355   : > { %2789 = vrot.lane.b32.xlu1 %v2688_v43, %s2936_s11 }
 0x356   : > { %2794 = vrot.lane.b32.xlu0 %v2793_v27, %s2936_s11 }
 0x39b   : > { %v3521_v24 = vpop.permute.xlu1 %2689 }
 0x39c   : > { %v3523_v13 = vpop.permute.xlu0 %2679  ;;  %v2692_v42 = vunpack.i.h.bf16 %v3521_v24  ;;  %v2691_v17 = vunpack.i.l.bf16 %v3521_v24 }
 0x39d   : > { %v2682_v0 = vunpack.i.h.bf16 %v3523_v13  ;;  %v2681_v51 = vunpack.i.l.bf16 %v3523_v13 }
 0x39e   : > { %v1661_v8 = vsel %vm592_vm4, %v2691_v17, %v2692_v42 }
 0x39f   : > { %v3525_v57 = vpop.permute.xlu1 %2694  ;;  %v1668_v4 = vsel %vm496_vm6, %v3559_v52, %v1661_v8 }
 0x3a0   : > { %v3527_v5 = vpop.permute.xlu0 %2684  ;;  %v2697_v49 = vunpack.i.h.bf16 %v3525_v57  ;;  %v2696_v20 = vunpack.i.l.bf16 %v3525_v57 }
 0x3a2   : > { %v1711_v7 = vsel %vm488_vm5, %v2696_v20, %v2697_v49 }
 0x3a3   : > { %v2705_v58 = vpop.permute.xlu1 %2704  ;;  %v1718_v18 = vsel %vm496_vm6, %v3559_v52, %v1711_v7 }
 0x3a4   : > { %v3529_v12 = vpop.permute.xlu0 %2699  ;;  %v2707_v9 = vunpack.i.h.bf16 %v2705_v58  ;;  %v2706_v22 = vunpack.i.l.bf16 %v2705_v58 }
 0x3a5   : > { %v2701_v14 = vunpack.i.l.bf16 %v3529_v12  ;;  %v2702_v26 = vunpack.i.h.bf16 %v3529_v12 }
 0x3a6   : > { %v1330_v31 = vsel %vm488_vm5, %v2706_v22, %v2707_v9  ;;  %v1331_v60 = vsel %vm488_vm5, %v2707_v9, %v2681_v51 }
 0x3a7   : > { %v3531_v15 = vpop.permute.xlu1 %2709  ;;  %v1712_v47 = vsel %vm488_vm5, %v2697_v49, %v2701_v14  ;;  %v1337_v27 = vsel %vm496_vm6, %v3566_v28, %v1330_v31  ;;  %v3627_v31 = vcombine.high %v3479_v46, %v3479_v46 }
 0x3a8   : > { %v2715_v19 = vpop.permute.xlu0 %2714  ;;  %v2712_v3 = vunpack.i.h.bf16 %v3531_v15  ;;  %v2711_v40 = vunpack.i.l.bf16 %v3531_v15  ;;  %v1719_v6 = vsel %vm496_vm6, %v3474_v11, %v1712_v47 }
 0x3a9   : > { %v2717_v35 = vunpack.i.h.bf16 %v2715_v19  ;;  %v2716_v63 = vunpack.i.l.bf16 %v2715_v19  ;;  %v2803_v15 = vpack.i.bf16 %v1719_v6, %v1718_v18  ;;  %v1338_v19 = vsel %vm496_vm6, %v3479_v46, %v1331_v60 }
 0x3aa   : > { %v1380_v61 = vsel %vm488_vm5, %v2682_v0, %v2711_v40  ;;  %v1381_v33 = vsel %vm488_vm5, %v2711_v40, %v2712_v3  ;;  %v1389_v6 = vsel %vm496_vm6, %v3627_v31, %v2712_v3 }
 0x3ab   : > { %v3533_v59 = vpop.permute.xlu1 %2719  ;;  %v1379_v13 = vsel %vm488_vm5, %v2717_v35, %v2682_v0  ;;  %v1387_v49 = vsel %vm496_vm6, %v3566_v28, %v1380_v61  ;;  %v1388_v9 = vsel %vm496_vm6, %v3479_v46, %v1381_v33  ;;  %v2813_v35 = vpack.i.bf16 %v1338_v19, %v1337_v27 }
 0x3ac   : > { %v3535_v62 = vpop.permute.xlu0 %2724  ;;  %v2722_v8 = vunpack.i.h.bf16 %v3533_v59  ;;  %v2721_v47 = vunpack.i.l.bf16 %v3533_v59  ;;  %v2818_v7 = vpack.i.bf16 %v1388_v9, %v1387_v49  ;;  %v1339_v61 = vsel %vm496_vm6, %v3627_v31, %v2681_v51 }
 0x3ad   : > { %v2687_v19 = vunpack.i.h.bf16 %v3527_v5 }
 0x3af   : > { %v3537_v48 = vpop.permute.xlu1 %2729 }
 0x3b0   : > { %v3539_v2 = vpop.permute.xlu0 %2734  ;;  %v2732_v40 = vunpack.i.h.bf16 %v3537_v48  ;;  %v2731_v0 = vunpack.i.l.bf16 %v3537_v48  ;;  %v1386_v48 = vsel %vm496_vm6, %v3481_v55, %v1379_v13 }
 0x3b1   : > { %v2828_v33 = vpack.i.bf16 %v1389_v6, %v1386_v48 }
 0x3b2   : > { %v1480_v60 = vsel %vm488_vm5, %v2731_v0, %v2732_v40 }
 0x3b3   : > { %v3543_v21 = vpop.permute.xlu1 %2739 }
 0x3b4   : > { %v3545_v29 = vpop.permute.xlu0 %2759  ;;  %v2742_v13 = vunpack.i.h.bf16 %v3543_v21 }
 0x3b5   : > { %v2761_v48 = vunpack.i.l.bf16 %v3545_v29 }
 0x3b7   : > { %v3553_v50 = vpop.permute.xlu1 %2744 }
 0x3b8   : > { %v3555_v30 = vpop.permute.xlu0 %2764  ;;  %v2747_v3 = vunpack.i.h.bf16 %v3553_v50  ;;  %v2746_v27 = vunpack.i.l.bf16 %v3553_v50 }
 0x3b9   : > { %v2766_v25 = vunpack.i.l.bf16 %v3555_v30 }
 0x3bb   : > { %v1662_v39 = vsel %vm592_vm4, %v2692_v42, %v2766_v25  ;;  %v3583_v10 = vpop.permute.xlu1 %2749  ;;  %v1329_v42 = vsel %vm488_vm5, %v2716_v63, %v2706_v22  ;;  %v2726_v22 = vunpack.i.l.bf16 %v3535_v62  ;;  %v2737_v63 = vunpack.i.h.bf16 %v3539_v2 }
 0x3bc   : > { %v2752_v37 = vunpack.i.h.bf16 %v3583_v10  ;;  %v2751_v43 = vunpack.i.l.bf16 %v3583_v10  ;;  %v1669_v44 = vsel %vm496_vm6, %v3474_v11, %v1662_v39  ;;  %v2727_v39 = vunpack.i.h.bf16 %v3535_v62 }
 0x3bd   : > { %v2798_v23 = vpack.i.bf16 %v1669_v44, %v1668_v4  ;;  %v2736_v4 = vunpack.i.l.bf16 %v3539_v2  ;;  %v1430_v44 = vsel %vm592_vm4, %v2721_v47, %v2722_v8  ;;  %v1431_v62 = vsel %vm592_vm4, %v2722_v8, %v2726_v22  ;;  %v3667_v8 = vpop.permute.xlu0 %2769 }
 0x3be   : > { %v1761_v36 = vsel %vm488_vm5, %v2702_v26, %v2751_v43  ;;  %v1762_v45 = vsel %vm488_vm5, %v2751_v43, %v2752_v37  ;;  %v1336_v43 = vsel %vm496_vm6, %v3481_v55, %v1329_v42  ;;  %v1487_v2 = vsel %vm496_vm6, %v3566_v28, %v1480_v60 }
 0x3bf   : > { %2799 = vrot.lane.b32.xlu1 %v2798_v23, %s2938_s13  ;;  %v1768_v53 = vsel %vm496_vm6, %v3559_v52, %v1761_v36  ;;  %v1769_v54 = vsel %vm496_vm6, %v3474_v11, %v1762_v45  ;;  %v3630_v59 = vpop.permute.xlu1 %2754  ;;  %v1481_v23 = vsel %vm488_vm5, %v2732_v40, %v2736_v4  ;;  %v2823_v36 = vpack.i.bf16 %v1339_v61, %v1336_v43 }
 0x3c0   : > { %v2808_v58 = vpack.i.bf16 %v1769_v54, %v1768_v53  ;;  %v1429_v45 = vsel %vm592_vm4, %v2727_v39, %v2721_v47  ;;  %v1488_v53 = vsel %vm496_vm6, %v3479_v46, %v1481_v23  ;;  %v1437_v54 = vsel %vm496_vm6, %v3566_v28, %v1430_v44 }
 0x3c1   : > { %v1479_v18 = vsel %vm488_vm5, %v2737_v63, %v2731_v0  ;;  %v1438_v51 = vsel %vm496_vm6, %v3479_v46, %v1431_v62  ;;  %v2686_v42 = vunpack.i.l.bf16 %v3527_v5  ;;  %v2838_v50 = vpack.i.bf16 %v1488_v53, %v1487_v2  ;;  %v2780_v23 = vpop.permute.xlu0 %2779 }
 0x3c2   : > { %2809 = vrot.lane.b32.xlu0 %v2808_v58, %s2939_s14  ;;  %v2741_v58 = vunpack.i.l.bf16 %v3543_v21  ;;  %v1439_v49 = vsel %vm496_vm6, %v3627_v31, %v2726_v22  ;;  %v2833_v9 = vpack.i.bf16 %v1438_v51, %v1437_v54  ;;  %v1486_v47 = vsel %vm496_vm6, %v3481_v55, %v1479_v18 }
 0x3c3   : > { %2804 = vrot.lane.b32.xlu1 %v2803_v15, %s2940_s15  ;;  %v3662_v15 = vpop.permute.xlu1 %2774  ;;  %v1489_v21 = vsel %vm496_vm6, %v3627_v31, %v2736_v4  ;;  %v1436_v40 = vsel %vm496_vm6, %v3481_v55, %v1429_v45  ;;  %v1580_v0 = vsel %vm488_vm5, %v2687_v19, %v2746_v27  ;;  %v1581_v5 = vsel %vm488_vm5, %v2746_v27, %v2747_v3 }
 0x3c4   : > { %v2776_v39 = vunpack.i.l.bf16 %v3662_v15  ;;  %v1531_v22 = vsel %vm488_vm5, %v2742_v13, %v2686_v42  ;;  %v2772_v4 = vunpack.i.h.bf16 %v3667_v8  ;;  %v2848_v43 = vpack.i.bf16 %v1489_v21, %v1486_v47 }
 0x3c5   : > { %v2843_v44 = vpack.i.bf16 %v1439_v49, %v1436_v40  ;;  %v1587_v60 = vsel %vm496_vm6, %v3566_v28, %v1580_v0  ;;  %v1588_v63 = vsel %vm496_vm6, %v3479_v46, %v1581_v5  ;;  %v2757_v45 = vunpack.i.h.bf16 %v3630_v59 }
 0x3c6   : > { %2819 = vrot.lane.b32.xlu0 %v2818_v7, %s2942_s16  ;;  %v2777_v7 = vunpack.i.h.bf16 %v3662_v15  ;;  %v1861_v62 = vsel %vm488_vm5, %v2772_v4, %v2776_v39  ;;  %v2756_v2 = vunpack.i.l.bf16 %v3630_v59  ;;  %v2762_v53 = vunpack.i.h.bf16 %v3545_v29  ;;  %v266_v15 = vld [vmem:[%s3894_s4 + $0x8] sm:$0xf] }
 0x3c7   : > { %2814 = vrot.lane.b32.xlu1 %v2813_v35, %s2943_s17  ;;  %v1530_v35 = vsel %vm488_vm5, %v2741_v58, %v2742_v13  ;;  %v2858_v54 = vpack.i.bf16 %v1588_v63, %v1587_v60  ;;  %v2771_v18 = vunpack.i.l.bf16 %v3667_v8  ;;  %v2767_v51 = vunpack.i.h.bf16 %v3555_v30 }
 0x3c8   : > { %v1862_v6 = vsel %vm488_vm5, %v2776_v39, %v2777_v7  ;;  %v1537_v61 = vsel %vm496_vm6, %v3566_v28, %v1530_v35  ;;  %v1868_v28 = vsel %vm496_vm6, %v3559_v52, %v1861_v62  ;;  %v1811_v13 = vsel %vm488_vm5, %v2756_v2, %v2757_v45 }
 0x3c9   : > { %v1812_v29 = vsel %vm488_vm5, %v2757_v45, %v2771_v18  ;;  %v1579_v8 = vsel %vm488_vm5, %v2762_v53, %v2687_v19  ;;  %v1589_v21 = vsel %vm496_vm6, %v3627_v31, %v2747_v3  ;;  %v1660_v40 = vsel %vm592_vm4, %v2767_v51, %v2691_v17 }
 0x3ca   : > { %2829 = vrot.lane.b32.xlu0 %v2828_v33, %s2942_s16  ;;  %v1538_v33 = vsel %vm496_vm6, %v3479_v46, %v1531_v22  ;;  %v1869_v46 = vsel %vm496_vm6, %v3474_v11, %v1862_v6  ;;  %v2782_v0 = vunpack.i.h.bf16 %v2780_v23  ;;  %v1818_v5 = vsel %vm496_vm6, %v3559_v52, %v1811_v13 }
 0x3cb   : > { %2824 = vrot.lane.b32.xlu1 %v2823_v36, %s2943_s17  ;;  %v1529_v36 = vsel %vm488_vm5, %v2761_v48, %v2741_v58  ;;  %v2853_v27 = vpack.i.bf16 %v1538_v33, %v1537_v61  ;;  %v2781_v58 = vunpack.i.l.bf16 %v2780_v23  ;;  %v2873_v49 = vpack.i.bf16 %v1869_v46, %v1868_v28  ;;  %v3787_v33 = vpop.permute.xlu1 %2789 }
 0x3cc   : > { %v1536_v59 = vsel %vm496_vm6, %v3481_v55, %v1529_v36  ;;  %v1819_v19 = vsel %vm496_vm6, %v3474_v11, %v1812_v29  ;;  %v1586_v24 = vsel %vm496_vm6, %v3481_v55, %v1579_v8  ;;  %v1647_v17 = vcombine.high %v3474_v11, %v3474_v11 }
 0x3cd   : > { %v2868_v3 = vpack.i.bf16 %v1819_v19, %v1818_v5  ;;  %v1667_v22 = vsel %vm496_vm6, %v3471_v16, %v1660_v40  ;;  %v1901_v10 = vsel %vm496_vm6, %v3559_v52, 0.0  ;;  %v1900_v61 = vsel %vm496_vm6, %v3471_v16, 0.0 }
 0x3ce   : > { %2839 = vrot.lane.b32.xlu0 %v2838_v50, %s2944_s18  ;;  %v2785_v50 = vpop.permute.xlu0 %2784  ;;  %v1670_v57 = vsel %vm496_vm6, %v1647_v17, %v2766_v25  ;;  %v1720_v30 = vsel %vm496_vm6, %v1647_v17, %v2701_v14  ;;  %v1770_v63 = vsel %vm496_vm6, %v1647_v17, %v2752_v37  ;;  %v1820_v14 = vsel %vm496_vm6, %v1647_v17, %v2771_v18 }
 0x3cf   : > { %2834 = vrot.lane.b32.xlu1 %v2833_v9, %s2945_s19  ;;  %v1539_v9 = vsel %vm496_vm6, %v3627_v31, %v2686_v42  ;;  %v1710_v42 = vsel %vm488_vm5, %v2781_v58, %v2696_v20  ;;  %v2786_v39 = vunpack.i.l.bf16 %v2785_v50  ;;  %v2878_v31 = vpack.i.bf16 %v1589_v21, %v1586_v24 }
 0x3d0   : > { %v2863_v47 = vpack.i.bf16 %v1539_v9, %v1536_v59  ;;  %v1760_v20 = vsel %vm488_vm5, %v2782_v0, %v2702_v26  ;;  %v2787_v35 = vunpack.i.h.bf16 %v2785_v50  ;;  %v1717_v55 = vsel %vm496_vm6, %v3471_v16, %v1710_v42 }
 0x3d1   : > { %v1810_v48 = vsel %vm488_vm5, %v2786_v39, %v2756_v2  ;;  %v2888_v25 = vpack.i.bf16 %v1720_v30, %v1717_v55  ;;  %v1902_v37 = vsel %vm496_vm6, %v3474_v11, 0.0  ;;  %vm3901_vm4 = vcmask 736256  }
 0x3d2   : > { %2849 = vrot.lane.b32.xlu0 %v2848_v43, %s2944_s18  ;;  %v2883_v43 = vpack.i.bf16 %v1670_v57, %v1667_v22  ;;  %v1860_v26 = vsel %vm488_vm5, %v2787_v35, %v2772_v4  ;;  %v1817_v60 = vsel %vm496_vm6, %v3471_v16, %v1810_v48  ;;  %v1870_v4 = vsel %vm496_vm6, %v1647_v17, %v2777_v7  ;;  %v3789_v36 = vpop.permute.xlu0 %2794  ;;  %vm3903_vm7 = vmmov %vm3901_vm4 }
 0x3d3   : > { %2844 = vrot.lane.b32.xlu1 %v2843_v44, %s2945_s19  ;;  %v1767_v44 = vsel %vm496_vm6, %v3471_v16, %v1760_v20  ;;  %v2898_v23 = vpack.i.bf16 %v1820_v14, %v1817_v60  ;;  %v1867_v62 = vsel %vm496_vm6, %v3471_v16, %v1860_v26  ;;  %v1903_v7 = vsel %vm496_vm6, %v1647_v17, 0.0 }
 0x3d4   : > { %v2893_v12 = vpack.i.bf16 %v1770_v63, %v1767_v44  ;;  %v2903_v6 = vpack.i.bf16 %v1870_v4, %v1867_v62 }
 0x3d6   : > { %2859 = vrot.lane.b32.xlu0 %v2858_v54, %s2946_s20 }
 0x3d7   : > { %2854 = vrot.lane.b32.xlu1 %v2853_v27, %s2947_s23 }
 0x3da   : > { %2874 = vrot.lane.b32.xlu0 %v2873_v49, %s2948_s24 }
 0x3db   : > { %2864 = vrot.lane.b32.xlu1 %v2863_v47, %s2947_s23 }
 0x3de   : > { %2879 = vrot.lane.b32.xlu0 %v2878_v31, %s2946_s20 }
 0x3df   : > { %2869 = vrot.lane.b32.xlu1 %v2868_v3, %s2949_s25 }
 0x3e2   : > { %2884 = vrot.lane.b32.xlu0 %v2883_v43, %s2938_s13 }
 0x3e3   : > { %2889 = vrot.lane.b32.xlu1 %v2888_v25, %s2940_s15  ;;  %s247_s15 = scalar_lea.vmem %s3896_s6, %s3913_s22 }
 0x3e6   : > { %2894 = vrot.lane.b32.xlu0 %v2893_v12, %s2939_s14 }
 0x3e7   : > { %2899 = vrot.lane.b32.xlu1 %v2898_v23, %s2949_s25 }
 0x3ea   : > { %2904 = vrot.lane.b32.xlu0 %v2903_v6, %s2948_s24 }
 0x3eb   : > { %1910 = vrot.lane.b32.xlu1 %v1901_v10, %s2951_s26 }
 0x3ee   : > { %1912 = vrot.lane.b32.xlu0 %v1902_v37, %s2951_s26 }
 0x3ef   : > { %1908 = vrot.lane.b32.xlu1 %v1900_v61, %s2951_s26 }
 0x3f2   : > { %1914 = vrot.lane.b32.xlu0 %v1903_v7, %s2951_s26  ;;  %v2791_v7 = vunpack.i.l.bf16 %v3787_v33 }
 0x3f3   : > { %274 = vperm.xlu1 %2908, %v266_v15   ;;  %v2792_v15 = vunpack.i.h.bf16 %v3787_v33 }
 0x3f5   : > { %v1631_v33 = vsel %vm488_vm5, %v2791_v7, %v2792_v15 }
 0x431   : > { %v3791_v11 = vpop.permute.xlu1 %2799 }
 0x434   : > { %v3793_v45 = vpop.permute.xlu0 %2809 }
 0x435   : > { %v3795_v2 = vpop.permute.xlu1 %2804 }
 0x438   : > { %v2820_v53 = vpop.permute.xlu0 %2819 }
 0x439   : > { %v2822_v54 = vunpack.i.h.bf16 %v2820_v53  ;;  %v2821_v18 = vunpack.i.l.bf16 %v2820_v53  ;;  %v2815_v27 = vpop.permute.xlu1 %2814  ;;  %v2796_v53 = vunpack.i.l.bf16 %v3789_v36 }
 0x43a   : > { %v2817_v28 = vunpack.i.h.bf16 %v2815_v27  ;;  %v2816_v46 = vunpack.i.l.bf16 %v2815_v27 }
 0x43b   : > { %v1403_v51 = vsel %vm564_vm8, %v2821_v18, %v2822_v54 }
 0x43c   : > { %v2830_v59 = vpop.permute.xlu0 %2829  ;;  %v1353_v13 = vsel %vm513_vm9, %v2816_v46, %v2817_v28 }
 0x43d   : > { %v2832_v29 = vunpack.i.h.bf16 %v2830_v59  ;;  %v2831_v58 = vunpack.i.l.bf16 %v2830_v59  ;;  %v2825_v8 = vpop.permute.xlu1 %2824  ;;  %v2372_v50 = vpack.c.bf16 %v1403_v51, %v1353_v13  ;;  %v2802_v51 = vunpack.i.h.bf16 %v3791_v11 }
 0x43e   : > { %v2827_v49 = vunpack.i.h.bf16 %v2825_v8  ;;  %v2826_v9 = vunpack.i.l.bf16 %v2825_v8  ;;  %v2801_v59 = vunpack.i.l.bf16 %v3791_v11  ;;  %v2807_v11 = vunpack.i.h.bf16 %v3795_v2 }
 0x43f   : > { %v1404_v47 = vsel %vm564_vm8, %v2822_v54, %v2832_v29  ;;  %v1402_v21 = vsel %vm564_vm8, %v2831_v58, %v2821_v18  ;;  %2373 = vmatprep.subr.bf16.mxu0 %v2372_v50  ;;  %v1630_v58 = vsel %vm488_vm5, %v2796_v53, %v2791_v7  ;;  %v2812_v50 = vunpack.i.h.bf16 %v3793_v45  ;;  %vm3904_vm8 = vmmov %vm3901_vm4 }
 0x440   : > { %v1352_v40 = vsel %vm513_vm9, %v2826_v9, %v2816_v46  ;;  %v1354_v0 = vsel %vm513_vm9, %v2817_v28, %v2827_v49  ;;  %v2840_v5 = vpop.permute.xlu0 %2839  ;;  %v2797_v46 = vunpack.i.h.bf16 %v3789_v36  ;;  %v2811_v49 = vunpack.i.l.bf16 %v3793_v45 }
 0x441   : > { %v2374_v19 = vpack.c.bf16 %v1402_v21, %v1352_v40  ;;  %v2397_v42 = vpack.c.bf16 %v1404_v47, %v1354_v0  ;;  %v2842_v39 = vunpack.i.h.bf16 %v2840_v5  ;;  %v2841_v24 = vunpack.i.l.bf16 %v2840_v5  ;;  %v2835_v17 = vpop.permute.xlu1 %2834 }
 0x442   : > { %v2837_v31 = vunpack.i.h.bf16 %v2835_v17  ;;  %v2836_v3 = vunpack.i.l.bf16 %v2835_v17  ;;  %v1632_v36 = vsel %vm488_vm5, %v2792_v15, %v2797_v46  ;;  %v2806_v40 = vunpack.i.l.bf16 %v3795_v2 }
 0x443   : > { %2375 = vmatpush1.bf16.msra.mxu0 %v2374_v19  ;;  %2398 = vmatpush3.bf16.msra.mxu1 %v2397_v42  ;;  %v1503_v22 = vsel %vm667_vm10, %v2841_v24, %v2842_v39  ;;  %v1684_v0 = vsel %vm851_vm14, %v2801_v59, %v2802_v51  ;;  %v1636_v17 = vsel %vm496_vm6, %v3471_v16, %v1630_v58  ;;  %vm3902_vm5 = vcmask 719872  }
 0x444   : > { %v2850_v57 = vpop.permute.xlu0 %2849  ;;  %v1453_v20 = vsel %vm616_vm11, %v2836_v3, %v2837_v31  ;;  %2399 = vmatprep.subr.bf16.mxu1 %v2941_v56  ;;  %v1734_v16 = vsel %vm902_vm15, %v2806_v40, %v2807_v11  ;;  %vm3905_vm9 = vmmov %vm3902_vm5 }
 0x445   : > { %v2852_v35 = vunpack.i.h.bf16 %v2850_v57  ;;  %v2851_v55 = vunpack.i.l.bf16 %v2850_v57  ;;  %v2845_v48 = vpop.permute.xlu1 %2844  ;;  %v2376_v43 = vpack.c.bf16 %v1503_v22, %v1453_v20 }
 0x446   : > { %v2847_v30 = vunpack.i.h.bf16 %v2845_v48  ;;  %v2846_v25 = vunpack.i.l.bf16 %v2845_v48 }
 0x447   : > { %v1502_v44 = vsel %vm667_vm10, %v2851_v55, %v2841_v24  ;;  %v1504_v26 = vsel %vm667_vm10, %v2842_v39, %v2852_v35  ;;  %2377 = vmatprep.subr.bf16.mxu0 %v2376_v43  ;;  %v1784_v35 = vsel %vm953_vm0, %v2811_v49, %v2812_v50  ;;  %v1612_v43 = vld [vmem:[#allocation3 + $0xc] sm:$0xf]  ;;  %vm3906_vm10 = vmmov %vm3902_vm5 }
 0x448   : > { %v1452_v60 = vsel %vm616_vm11, %v2846_v25, %v2836_v3  ;;  %v1454_v63 = vsel %vm616_vm11, %v2837_v31, %v2847_v30  ;;  %v2860_v12 = vpop.permute.xlu0 %2859  ;;  %v1637_v3 = vsel %vm496_vm6, %v3559_v52, %v1631_v33  ;;  %v1638_v25 = vsel %vm496_vm6, %v1612_v43, %v1632_v36 }
 0x449   : > { %v2378_v14 = vpack.c.bf16 %v1502_v44, %v1452_v60  ;;  %v2400_v23 = vpack.c.bf16 %v1504_v26, %v1454_v63  ;;  %v2862_v62 = vunpack.i.h.bf16 %v2860_v12  ;;  %v2861_v4 = vunpack.i.l.bf16 %v2860_v12  ;;  %v2855_v6 = vpop.permute.xlu1 %2854 }
 0x44a   : > { %v2857_v10 = vunpack.i.h.bf16 %v2855_v6  ;;  %v2856_v37 = vunpack.i.l.bf16 %v2855_v6  ;;  %v2384_v20 = vpack.c.bf16 %v1684_v0, %v1637_v3  ;;  %vm3907_vm11 = vcmask 703488   ;;  %v2206_v0 = vld [vmem:[%s3895_s5 + $0x4] sm:$0xf] }
 0x44b   : > { %2379 = vmatpush1.bf16.msra.mxu0 %v2378_v14  ;;  %2401 = vmatpush3.bf16.msra.mxu1 %v2400_v23  ;;  %v1603_v61 = vsel %vm769_vm13, %v2861_v4, %v2862_v62  ;;  %v2122_v3 = vld [vmem:[%s3892_s2] sm:$0xff] }
 0x44c   : > { %v3814_v54 = vpop.permute.xlu0 %2874  ;;  %v1553_v18 = vsel %vm718_vm12, %v2856_v37, %v2857_v10  ;;  %2402 = vmatprep.subr.bf16.mxu1 %v2941_v56 }
 0x44d   : > { %v2865_v27 = vpop.permute.xlu1 %2864  ;;  %v2380_v28 = vpack.c.bf16 %v1603_v61, %v1553_v18  ;;  %v2877_v60 = vunpack.i.h.bf16 %v3814_v54  ;;  %v2876_v63 = vunpack.i.l.bf16 %v3814_v54 }
 0x44e   : > { %v2867_v13 = vunpack.i.h.bf16 %v2865_v27  ;;  %v2866_v29 = vunpack.i.l.bf16 %v2865_v27 }
 0x44f   : > { %2381 = vmatprep.subr.bf16.mxu0 %v2380_v28 }
 0x450   : > { %v2880_v8 = vpop.permute.xlu0 %2879  ;;  %v1552_v5 = vsel %vm718_vm12, %v2866_v29, %v2856_v37  ;;  %v1554_v19 = vsel %vm718_vm12, %v2857_v10, %v2867_v13  ;;  %v2388_v10 = vpack.c.bf16 %v1784_v35, %v1734_v16  ;;  %vm3908_vm12 = vmmov %vm3907_vm11  ;;  %v2123_v16 = vld [vmem:[%s3892_s2 + $0x8] sm:$0xf] }
 0x451   : > { %v2882_v9 = vunpack.i.h.bf16 %v2880_v8  ;;  %v2881_v47 = vunpack.i.l.bf16 %v2880_v8  ;;  %v3825_v21 = vpop.permute.xlu1 %2869 }
 0x452   : > { %v2872_v55 = vunpack.i.h.bf16 %v3825_v21  ;;  %v2871_v48 = vunpack.i.l.bf16 %v3825_v21 }
 0x453   : > { %v1602_v42 = vsel %vm769_vm13, %v2881_v47, %v2861_v4  ;;  %v1604_v45 = vsel %vm769_vm13, %v2862_v62, %v2882_v9  ;;  %vm3909_vm13 = vmmov %vm3907_vm11 }
 0x454   : > { %v2382_v39 = vpack.c.bf16 %v1602_v42, %v1552_v5  ;;  %v2403_v24 = vpack.c.bf16 %v1604_v45, %v1554_v19  ;;  %v2885_v31 = vpop.permute.xlu0 %2884  ;;  %v1834_v15 = vsel %vm3901_vm4, %v2871_v48, %v2872_v55 }
 0x455   : > { %v2887_v2 = vunpack.i.h.bf16 %v2885_v31  ;;  %v2886_v22 = vunpack.i.l.bf16 %v2885_v31  ;;  %v2890_v57 = vpop.permute.xlu1 %2889 }
 0x456   : > { %v2892_v30 = vunpack.i.h.bf16 %v2890_v57  ;;  %2383 = vmatpush1.bf16.msra.mxu0 %v2382_v39  ;;  %2404 = vmatpush3.bf16.msra.mxu1 %v2403_v24  ;;  %v2891_v26 = vunpack.i.l.bf16 %v2890_v57 }
 0x457   : > { %v1685_v52 = vsel %vm851_vm14, %v2802_v51, %v2887_v2  ;;  %v1683_v44 = vsel %vm851_vm14, %v2886_v22, %v2801_v59  ;;  %2385 = vmatprep.subr.bf16.mxu0 %v2384_v20  ;;  %2405 = vmatprep.subr.bf16.mxu1 %v2941_v56  ;;  %v1884_v51 = vsel %vm3902_vm5, %v2876_v63, %v2877_v60  ;;  %vm3910_vm14 = vcmask 850944  }
 0x458   : > { %v2406_v12 = vpack.c.bf16 %v1685_v52, %v1638_v25  ;;  %v2386_v14 = vpack.c.bf16 %v1683_v44, %v1636_v17  ;;  %v2895_v23 = vpop.permute.xlu0 %2894  ;;  %v1735_v37 = vsel %vm902_vm15, %v2807_v11, %v2892_v30  ;;  %v1733_v7 = vsel %vm902_vm15, %v2891_v26, %v2806_v40  ;;  %vm3911_vm15 = vmmov %vm3910_vm14 }
 0x459   : > { %v2897_v62 = vunpack.i.h.bf16 %v2895_v23  ;;  %v2896_v4 = vunpack.i.l.bf16 %v2895_v23  ;;  %v2900_v6 = vpop.permute.xlu1 %2899  ;;  %v2392_v33 = vpack.c.bf16 %v1884_v51, %v1834_v15 }
 0x45a   : > { %v2901_v61 = vunpack.i.l.bf16 %v2900_v6  ;;  %2387 = vmatpush1.bf16.msra.mxu0 %v2386_v14  ;;  %2407 = vmatpush3.bf16.msra.mxu1 %v2406_v12  ;;  %v2902_v18 = vunpack.i.h.bf16 %v2900_v6 }
 0x45b   : > { %v1785_v53 = vsel %vm953_vm0, %v2812_v50, %v2897_v62  ;;  %v1783_v54 = vsel %vm953_vm0, %v2896_v4, %v2811_v49  ;;  %2389 = vmatprep.subr.bf16.mxu0 %v2388_v10  ;;  %2408 = vmatprep.subr.bf16.mxu1 %v2941_v56 }
 0x45c   : > { %v2390_v27 = vpack.c.bf16 %v1783_v54, %v1733_v7  ;;  %v2409_v28 = vpack.c.bf16 %v1785_v53, %v1735_v37  ;;  %v2905_v46 = vpop.permute.xlu0 %2904  ;;  %v1833_v58 = vsel %vm3903_vm7, %v2901_v61, %v2871_v48  ;;  %v1835_v8 = vsel %vm3904_vm8, %v2872_v55, %v2902_v18 }
 0x45d   : > { %v2907_v59 = vunpack.i.h.bf16 %v2905_v46  ;;  %v2906_v13 = vunpack.i.l.bf16 %v2905_v46  ;;  %v1911_v29 = vpop.permute.xlu1 %1910 }
 0x45e   : > { %2391 = vmatpush1.bf16.msra.mxu0 %v2390_v27  ;;  %2410 = vmatpush3.bf16.msra.mxu1 %v2409_v28 }
 0x45f   : > { %v1883_v50 = vsel %vm3905_vm9, %v2906_v13, %v2876_v63  ;;  %v1885_v49 = vsel %vm3906_vm10, %v2877_v60, %v2907_v59  ;;  %2393 = vmatprep.subr.bf16.mxu0 %v2392_v33  ;;  %2411 = vmatprep.subr.bf16.mxu1 %v2941_v56 }
 0x460   : > { %v2394_v9 = vpack.c.bf16 %v1883_v50, %v1833_v58  ;;  %v2412_v47 = vpack.c.bf16 %v1885_v49, %v1835_v8  ;;  %v1913_v21 = vpop.permute.xlu0 %1912 }
 0x461   : > { %v1917_v36 = vsel %vm3907_vm11, %v1911_v29, %v1913_v21  ;;  %v1909_v11 = vpop.permute.xlu1 %1908 }
 0x462   : > { %2395 = vmatpush1.bf16.msra.mxu0 %v2394_v9  ;;  %2413 = vmatpush3.bf16.msra.mxu1 %v2412_v47  ;;  %v1916_v5 = vsel %vm3908_vm12, %v1909_v11, %v1911_v29 }
 0x463   : > { %1993 = vmatprep.subr.mxu0 %v1917_v36  ;;  %2309 = vmatprep.subr.mxu1 %v2934_v1 }
 0x464   : > { %v1915_v40 = vpop.permute.xlu0 %1914 }
 0x465   : > { %v1918_v56 = vsel %vm3909_vm13, %v1913_v21, %v1915_v40 }
 0x466   : > { %1994 = vmatpush1.msra.mxu0 %v1916_v5  ;;  %2310 = vmatpush3.msra.mxu1 %v1918_v56 }
 0x467   : > { %2207 = vmatmul.mubr.msk.f32.vlgmr.msra.gmra.mrb[2].mxu0 %vm3910_vm14, %v2206_v0  ;;  %2312 = vmatmul.mubr.msk.f32.vlgmr.msra.gmra.mrb[4].mxu1 %vm3911_vm15, %v2206_v0 }
 0x472   : > { %v275_v19 = vpop.permute.xlu1 %274 }
 0x473   : > { %v433_v42 = vadd.f32 %v3024_v32, %v275_v19  ;;  %v2125_v32 = vcombine.high %v2122_v3, %v2122_v3 }
 0x53a   : > { %v2035_v45 = vpop.f32.mrb[2].mxu0  ;;  %v2106_v1 = vpop.f32.mrb[4].mxu1 }
 0x53b   : > { %v2414_v39 = vadd.f32 %v2035_v45, %v275_v19  ;;  %v2107_v24 = vadd.f32 %v2106_v1, %v433_v42  ;;  %v2037_v17 = vpop.f32.mrb[3].mxu0  ;;  %v2313_v31 = vpop.f32.mrb[5].mxu1 }
 0x53c   : > { %v2415_v2 = vadd.f32 %v2037_v17, %v275_v19 }
 0x53d   : > { %vm2110_vm0 = vcmp.gt.f32.partialorder %v2414_v39, 0.0  ;;  %v2113_v22 = vmul.f32 0.2, %v2414_v39  ;;  %vm2112_vm1 = vcmp.gt.f32.partialorder %v2107_v24, 0.0  ;;  %v2115_v57 = vmul.f32 0.2, %v2107_v24 }
 0x53e   : > { %vm2111_vm2 = vcmp.gt.f32.partialorder %v2415_v2, 0.0  ;;  %v2114_v20 = vmul.f32 0.2, %v2415_v2 }
 0x53f   : > { %v2116_v35 = vsel %vm2110_vm0, %v2414_v39, %v2113_v22  ;;  %v2118_v55 = vsel %vm2112_vm1, %v2107_v24, %v2115_v57 }
 0x540   : > { %v2119_v48 = vmul.f32 %v2116_v35, %v3026_v34  ;;  %v2121_v43 = vmul.f32 %v2118_v55, %v3038_v41  ;;  %v2117_v30 = vsel %vm2111_vm2, %v2415_v2, %v2114_v20 }
 0x541   : > { %v2120_v25 = vmul.f32 %v2117_v30, %v3032_v38 }
 0x542   : > { %v2127_v52 = vmul.f32 %v2122_v3, %v2119_v48  ;;  %v2129_v26 = vmul.f32 %v2123_v16, %v2121_v43 }
 0x543   : > { %v2128_v44 = vmul.f32 %v2125_v32, %v2120_v25 }
 0x544   : > { %v2130_v60 = vsel %vm496_vm6, %v2127_v52, 0.0  ;;  %v2133_v34 = vsel %vm496_vm6, %v2129_v26, 0.0 }
 0x545   : > { %v2131_v63 = vsel %vm496_vm6, %v2128_v44, 0.0 }
 0x546   : > { %v2132_v12 = vadd.f32 %v2131_v63, %v2130_v60 }
 0x548   : > { %v2134_v14 = vadd.f32 %v2133_v34, %v2132_v12 }
 0x54a   : > { %2135 = vadd.xlane.f32.xlu0 %v2134_v14 }
 0x5d7   : > { %v2136_v41 = vpop.xlane.xlu0 %2135 }
 0x5d8   : > { %v2137_v23 = vrot.slane %v2136_v41, 4 }
 0x5da   : > { %v2138_v62 = vadd.f32 %v2137_v23, %v2136_v41 }
 0x5dc   : > { %v2139_v4 = vrot.slane %v2138_v62, 2 }
 0x5de   : > { %v2140_v6 = vadd.f32 %v2139_v4, %v2138_v62 }
 0x5e0   : > { %v2141_v10 = vrot.slane %v2140_v6, 1 }
 0x5e2   : > { %v2142_v38 = vadd.f32 %v2141_v10, %v2140_v6 }
 0x5e4   : > { %2419 = vpush %v2142_v38 }
 0x615   : > { %s2420_s16 = spop %2419 }
 0x616   : > { %v2144_v37 = vstv %s2420_s16 }
 0x617   : > { %2146 = vst.msk [vmem:[%s247_s15] sm:$0x1] %vm2145_vm3, %v2144_v37 }
 0x618 PF: > { %s16_s21 = sadd.s32 1, %s2932_s21  }
 0x619   : > { %p13_p4 = scmp.ge.s32.totalorder %s16_s21, 4  }
 0x61b   :  { %15 = sbr.rel (!%p13_p4) target bundleno = 1 (0x1), region = 75 }

</bundles_post_ra>
